<compile_context>
chip_gen: v7x
topology: tpu7x:2x2x1
jax: 0.10.0
libtpu: 0.0.40
codegen_flags: <defaults>
</compile_context>

<pallas_src>
import functools

import jax
import jax.numpy as jnp
from jax import lax
from jax.experimental import pallas as pl
from jax.experimental.pallas import tpu as pltpu

LEAKY_SLOPE = 0.01
BN_EPS = 1e-5


# ----------------------------------------------------------------------------
# Fused kernel: all n_iter AttnConv iterations + MaxPool2d(2), whole batch in VMEM.
# Activation layout: (N, H, C*W) with lane index = c*W + w  (C-major fold).
# ----------------------------------------------------------------------------
def _encoder_kernel(x_ref, band1_ref, band2_ref, g1_ref, be1_ref, g2_ref, be2_ref,
                    p_ref, cw1_ref, cw2_ref, crep_ref, bsp_ref, esel_ref, osel_ref,
                    y_ref, pool_ref,
                    pad1_ref, pad2_ref, sp_ref, x1_ref,
                    *, N, H, W, Cin, Cout, n_iter):
    CW = Cout * W
    CWIN = Cin * W
    M = N * H

    # One-time zero of the halo scratch buffers.  Interiors are overwritten every
    # iteration; the halo ring stays zero across iterations (scratch is NOT
    # zero-initialized by Pallas, so this memset is required).
    pad1_ref[...] = jnp.zeros_like(pad1_ref)
    pad2_ref[...] = jnp.zeros_like(pad2_ref)
    sp_ref[...] = jnp.zeros_like(sp_ref)

    def sigmoid(v):
        return 1.0 / (1.0 + jnp.exp(-v))

    def band_conv(pad, band, kdim):
        # 3x3 conv as 3 banded MXU matmuls (W boundary folded into the band).
        acc = jnp.zeros((M, CW), jnp.float32)
        for dy in range(3):
            lhs = pad[:, dy:dy + H, :].reshape(M, kdim)
            acc = acc + jnp.dot(lhs, band[dy], preferred_element_type=jnp.float32)
        return acc

    def bn_leaky(yv, g_row, b_row):
        # Training-mode BN over (N,H,W) per channel; two-pass (stable) variance.
        # p_ref projects lane sums onto per-channel means broadcast back per lane.
        mean = jnp.dot(jnp.sum(yv, axis=0, keepdims=True), p_ref[...],
                       preferred_element_type=jnp.float32)               # (1, CW)
        d = yv - mean
        var = jnp.dot(jnp.sum(d * d, axis=0, keepdims=True), p_ref[...],
                      preferred_element_type=jnp.float32)                # (1, CW)
        z = d * (g_row * lax.rsqrt(var + BN_EPS)) + b_row
        return jnp.where(z >= 0, z, LEAKY_SLOPE * z)

    def attn_conv(a):
        # ---- conv1 -> BN -> LeakyReLU  (conv bias omitted: cancelled by BN mean) --
        pad1_ref[:, 1:H + 1, :] = a
        x1 = bn_leaky(band_conv(pad1_ref, band1_ref, CWIN),
                      g1_ref[...], be1_ref[...]).reshape(N, H, CW)
        x1_ref[...] = x1                                  # stage: bound live range

        # ---- CBAM channel attention ------------------------------------------
        h_avg = jnp.mean(x1, axis=1)                      # (N, CW)
        h_max = jnp.max(x1, axis=1)                       # (N, CW)
        c_avg = jnp.concatenate(
            [jnp.mean(h_avg[:, c * W:(c + 1) * W], axis=1, keepdims=True)
             for c in range(Cout)], axis=1)               # (N, Cout)
        c_max = jnp.concatenate(
            [jnp.max(h_max[:, c * W:(c + 1) * W], axis=1, keepdims=True)
             for c in range(Cout)], axis=1)                # (N, Cout)
        stacked = jnp.concatenate([c_avg, c_max], axis=0)  # (2N, Cout): 2 matmuls
        hid = jnp.maximum(jnp.dot(stacked, cw1_ref[...],
                                  preferred_element_type=jnp.float32), 0.0)
        mlp = jnp.dot(hid, cw2_ref[...], preferred_element_type=jnp.float32)
        ca = sigmoid(mlp[:N] + mlp[N:])                    # (N, Cout)
        ca_lane = jnp.dot(ca, crep_ref[...],
                          preferred_element_type=jnp.float32)             # (N, CW)
        xca = x1_ref[...] * ca_lane[:, None, :]            # (N, H, CW)

        # ---- CBAM spatial attention --------------------------------------------
        # Per-pixel channel mean/max from the C-major lane blocks; 7x7 conv as 7
        # banded MXU matmuls whose output logits are already replicated per lane.
        mx = xca[:, :, 0:W]
        sm = xca[:, :, 0:W]
        for c in range(1, Cout):
            blk = xca[:, :, c * W:(c + 1) * W]
            mx = jnp.maximum(mx, blk)
            sm = sm + blk
        sp_ref[:, 3:H + 3, 0:W] = sm * (1.0 / Cout)
        sp_ref[:, 3:H + 3, W:2 * W] = mx
        logit = jnp.zeros((M, CW), jnp.float32)
        for dy in range(7):
            lhs = sp_ref[:, dy:dy + H, :].reshape(M, 2 * W)
            logit = logit + jnp.dot(lhs, bsp_ref[dy],
                                    preferred_element_type=jnp.float32)
        attn = xca * sigmoid(logit).reshape(N, H, CW)

        # ---- conv2 -> BN -> LeakyReLU, residual ---------------------------------
        pad2_ref[:, 1:H + 1, :] = attn
        x2 = bn_leaky(band_conv(pad2_ref, band2_ref, CW),
                      g2_ref[...], be2_ref[...]).reshape(N, H, CW)
        return x1_ref[...] + x2

    a = x_ref[...]
    if n_iter == 1:
        a = attn_conv(a)
    else:
        a = lax.fori_loop(0, n_iter, lambda i, v: attn_conv(v), a)

    y_ref[...] = a

    # ---- fused MaxPool2d(2) ---------------------------------------------------
    # H: sublane pair-max.  W: even/odd lane selection matmuls + |a-b| max
    # (keeps everything lane-dense; no lane-splitting reshape of the big tensor).
    ah = jnp.max(a.reshape(N, H // 2, 2, CW), axis=2).reshape(N * (H // 2), CW)
    ev = jnp.dot(ah, esel_ref[...], preferred_element_type=jnp.float32)
    od = jnp.dot(ah, osel_ref[...], preferred_element_type=jnp.float32)
    pool_ref[...] = (0.5 * (ev + od + jnp.abs(ev - od))).reshape(N, H // 2, CW // 2)


# ----------------------------------------------------------------------------
# Wrapper: NCHW in / NCHW out.  Builds the banded weight matrices once per call.
# ----------------------------------------------------------------------------
def encoder_layer(x_nchw, params, n_iter):
    N, Cin, H, W = x_nchw.shape
    w1, b1, g1, be1 = params["conv1"]
    w2, b2, g2, be2 = params["conv2"]
    cw1, cw2, wsp = params["cbam"]
    Cout = w1.shape[-1]
    assert n_iter >= 1
    assert n_iter == 1 or Cin == Cout, "n_iter > 1 requires in_channels == out_channels"
    assert H % 2 == 0 and W % 2 == 0
    CW = Cout * W
    CWIN = Cin * W

    # Fold input:  (N, C, H, W) -> (N, H, C*W)   [lane = c*W + w]
    xf = jnp.transpose(x_nchw, (0, 2, 1, 3)).reshape(N, H, CWIN)

    # Banded 3x3 conv weights: band[dy][ci*W+wi, co*W+w] = w[dy,dx,ci,co], wi=w+dx-1.
    def band3(w_hwio):
        return jnp.stack([
            sum(jnp.kron(w_hwio[dy, dx], jnp.eye(W, k=1 - dx, dtype=jnp.float32))
                for dx in range(3))
            for dy in range(3)])

    # Banded 7x7 spatial-attention weights, output replicated over channel lanes.
    def band7(wsp_772):
        return jnp.stack([
            sum(jnp.kron(jnp.tile(wsp_772[dy, dx][:, None], (1, Cout)),
                         jnp.eye(W, k=3 - dx, dtype=jnp.float32))
                for dx in range(7))
            for dy in range(7)])

    band1 = band3(w1)                                           # (3, CWIN, CW)
    band2 = band3(w2)                                           # (3, CW,   CW)
    bsp = band7(wsp)                                            # (7, 2W,   CW)

    # BN channel-group projection (includes the 1/(N*H*W) factor) and lane vectors.
    P = jnp.kron(jnp.eye(Cout, dtype=jnp.float32),
                 jnp.ones((W, W), jnp.float32)) / float(N * H * W)
    crep = jnp.kron(jnp.eye(Cout, dtype=jnp.float32), jnp.ones((1, W), jnp.float32))
    g1l, be1l = jnp.repeat(g1, W)[None, :], jnp.repeat(be1, W)[None, :]
    g2l, be2l = jnp.repeat(g2, W)[None, :], jnp.repeat(be2, W)[None, :]

    # Even/odd lane selection matrices for the W half of the 2x2 max-pool.
    esel = jnp.eye(CW, dtype=jnp.float32)[0::2].T               # (CW, CW//2)
    osel = jnp.eye(CW, dtype=jnp.float32)[1::2].T

    kernel = functools.partial(_encoder_kernel, N=N, H=H, W=W, Cin=Cin, Cout=Cout,
                               n_iter=n_iter)
    y_f, pool_f = pl.pallas_call(
        kernel,
        out_shape=(jax.ShapeDtypeStruct((N, H, CW), jnp.float32),
                   jax.ShapeDtypeStruct((N, H // 2, CW // 2), jnp.float32)),
        scratch_shapes=[
            pltpu.VMEM((N, H + 2, CWIN), jnp.float32),    # conv1 H-halo
            pltpu.VMEM((N, H + 2, CW), jnp.float32),      # conv2 H-halo
            pltpu.VMEM((N, H + 6, 2 * W), jnp.float32),   # 7x7 stat H-halo
            pltpu.VMEM((N, H, CW), jnp.float32),          # x1 staging
        ],
    )(xf, band1, band2, g1l, be1l, g2l, be2l, P, cw1, cw2, crep, bsp, esel, osel)

    # Unfold back to NCHW.
    y = jnp.transpose(y_f.reshape(N, H, Cout, W), (0, 2, 1, 3))
    pooled = jnp.transpose(pool_f.reshape(N, H // 2, Cout, W // 2), (0, 2, 1, 3))
    return pooled, y


# ----------------------------------------------------------------------------
# Pure-JAX reference (NHWC) for correctness check.
# ----------------------------------------------------------------------------
def ref_encoder_layer(x, params, n_iter):
    def conv_bn_act(x, w, b, g, be):
        y = lax.conv_general_dilated(x, w, (1, 1), "SAME",
                                     dimension_numbers=("NHWC", "HWIO", "NHWC"),
                                     precision=lax.Precision.HIGHEST) + b
        m = jnp.mean(y, axis=(0, 1, 2))
        v = jnp.var(y, axis=(0, 1, 2))
        z = (y - m) / jnp.sqrt(v + BN_EPS) * g + be
        return jnp.where(z >= 0, z, LEAKY_SLOPE * z)

    def cbam_ref(x, w1, w2, wsp):
        avg = jnp.mean(x, axis=(1, 2))
        mx = jnp.max(x, axis=(1, 2))
        mlp = lambda v: jnp.maximum(v @ w1, 0.0) @ w2
        ca = jax.nn.sigmoid(mlp(avg) + mlp(mx))[:, None, None, :]
        xca = x * ca
        sp = jnp.stack([jnp.mean(xca, axis=3), jnp.max(xca, axis=3)], axis=-1)
        sa = lax.conv_general_dilated(sp, wsp[..., None], (1, 1), "SAME",
                                      dimension_numbers=("NHWC", "HWIO", "NHWC"),
                                      precision=lax.Precision.HIGHEST)
        return xca * jax.nn.sigmoid(sa)

    for _ in range(n_iter):
        x1 = conv_bn_act(x, *params["conv1"])
        a = cbam_ref(x1, *params["cbam"])
        x = x1 + conv_bn_act(a, *params["conv2"])
    y = x
    N, H, W, C = x.shape
    pooled = jnp.max(x.reshape(N, H // 2, 2, W // 2, 2, C), axis=(2, 4))
    return pooled, y


# ----------------------------------------------------------------------------
# Deterministic parameter init & driver
# ----------------------------------------------------------------------------
def init_params(key, c_in, c_out):
    ks = jax.random.split(key, 8)

    def conv_params(k, cin, cout):
        k1, k2, k3, k4 = jax.random.split(k, 4)
        w = jax.random.normal(k1, (3, 3, cin, cout), jnp.float32) * (1.0 / (3.0 * (cin ** 0.5)))
        b = 0.1 * jax.random.normal(k2, (cout,), jnp.float32)
        gamma = 1.0 + 0.1 * jax.random.normal(k3, (cout,), jnp.float32)
        beta = 0.1 * jax.random.normal(k4, (cout,), jnp.float32)
        return w, b, gamma, beta

    return {
        "conv1": conv_params(ks[0], c_in, c_out),
        "conv2": conv_params(ks[1], c_out, c_out),
        "cbam": (0.4 * jax.random.normal(ks[2], (c_out, c_out // 2), jnp.float32),
                 0.4 * jax.random.normal(ks[3], (c_out // 2, c_out), jnp.float32),
                 0.3 * jax.random.normal(ks[4], (7, 7, 2), jnp.float32)),
    }


if __name__ == "__main__":
    N, C_IN, C_OUT, H, W = 2, 8, 8, 16, 16   # in==out so n_iter>1 is well-defined
    N_ITER = 2

    key = jax.random.PRNGKey(0)
    k_x, k_p = jax.random.split(key)
    x_nchw = jax.random.normal(k_x, (N, C_IN, H, W), jnp.float32)   # PyTorch layout
    params = init_params(k_p, C_IN, C_OUT)

    fwd = jax.jit(lambda xx: encoder_layer(xx, params, N_ITER))
    pooled, y = fwd(x_nchw)
    jax.block_until_ready((pooled, y))

    # correctness check vs pure-JAX reference
    x_nhwc = jnp.transpose(x_nchw, (0, 2, 3, 1))
    ref_pooled_nhwc, ref_y_nhwc = ref_encoder_layer(x_nhwc, params, N_ITER)
    ref_pooled = jnp.transpose(ref_pooled_nhwc, (0, 3, 1, 2))
    ref_y = jnp.transpose(ref_y_nhwc, (0, 3, 1, 2))
    for got, ref in ((pooled, ref_pooled), (y, ref_y)):
        tol = 1e-2 + 1e-2 * float(jnp.max(jnp.abs(ref)))
        err = float(jnp.max(jnp.abs(got - ref)))
        assert err <= tol, f"mismatch: max abs err {err} > tol {tol}"

    print("KERNEL_OK")
</pallas_src>

<mosaic_0001>
module attributes {stable_mosaic.version = 11 : i64} {
  func.func @_encoder_kernel(%arg0: memref<2x16x128xf32, #tpu.memory_space<vmem>>, %arg1: memref<3x128x128xf32, #tpu.memory_space<vmem>>, %arg2: memref<3x128x128xf32, #tpu.memory_space<vmem>>, %arg3: memref<1x128xf32, #tpu.memory_space<vmem>>, %arg4: memref<1x128xf32, #tpu.memory_space<vmem>>, %arg5: memref<1x128xf32, #tpu.memory_space<vmem>>, %arg6: memref<1x128xf32, #tpu.memory_space<vmem>>, %arg7: memref<128x128xf32, #tpu.memory_space<vmem>>, %arg8: memref<8x4xf32, #tpu.memory_space<vmem>>, %arg9: memref<4x8xf32, #tpu.memory_space<vmem>>, %arg10: memref<8x128xf32, #tpu.memory_space<vmem>>, %arg11: memref<7x32x128xf32, #tpu.memory_space<vmem>>, %arg12: memref<128x64xf32, #tpu.memory_space<vmem>>, %arg13: memref<128x64xf32, #tpu.memory_space<vmem>>, %arg14: memref<2x16x128xf32, #tpu.memory_space<vmem>>, %arg15: memref<2x8x64xf32, #tpu.memory_space<vmem>>, %arg16: memref<2x18x128xf32, #tpu.memory_space<vmem>>, %arg17: memref<2x18x128xf32, #tpu.memory_space<vmem>>, %arg18: memref<2x22x32xf32, #tpu.memory_space<vmem>>, %arg19: memref<2x16x128xf32, #tpu.memory_space<vmem>>) attributes {dimension_semantics = [], scalar_prefetch = 0 : i64, scratch_operands = 4 : i64, tpu.core_type = #tpu.core_type<tc>} {
    %cst = arith.constant 0.000000e+00 : f32
    %0 = vector.broadcast %cst : f32 to vector<2x18x128xf32>
    %c0 = arith.constant 0 : index
    %c0_0 = arith.constant 0 : index
    %c0_1 = arith.constant 0 : index
    %1 = vector.load %arg16[%c0, %c0_0, %c0_1] : memref<2x18x128xf32, #tpu.memory_space<vmem>>, vector<2x18x128xf32>
    tpu.vector_store %arg16[%c0, %c0_0, %c0_1], %0 {strides = array<i32>} : memref<2x18x128xf32, #tpu.memory_space<vmem>>, vector<2x18x128xf32>,
    %cst_2 = arith.constant 0.000000e+00 : f32
    %2 = vector.broadcast %cst_2 : f32 to vector<2x18x128xf32>
    %c0_3 = arith.constant 0 : index
    %c0_4 = arith.constant 0 : index
    %c0_5 = arith.constant 0 : index
    %3 = vector.load %arg17[%c0_3, %c0_4, %c0_5] : memref<2x18x128xf32, #tpu.memory_space<vmem>>, vector<2x18x128xf32>
    tpu.vector_store %arg17[%c0_3, %c0_4, %c0_5], %2 {strides = array<i32>} : memref<2x18x128xf32, #tpu.memory_space<vmem>>, vector<2x18x128xf32>,
    %cst_6 = arith.constant 0.000000e+00 : f32
    %4 = vector.broadcast %cst_6 : f32 to vector<2x22x32xf32>
    %c0_7 = arith.constant 0 : index
    %c0_8 = arith.constant 0 : index
    %c0_9 = arith.constant 0 : index
    %5 = vector.load %arg18[%c0_7, %c0_8, %c0_9] : memref<2x22x32xf32, #tpu.memory_space<vmem>>, vector<2x22x32xf32>
    tpu.vector_store %arg18[%c0_7, %c0_8, %c0_9], %4 {strides = array<i32>} : memref<2x22x32xf32, #tpu.memory_space<vmem>>, vector<2x22x32xf32>,
    %c0_10 = arith.constant 0 : index
    %c0_11 = arith.constant 0 : index
    %c0_12 = arith.constant 0 : index
    %6 = vector.load %arg0[%c0_10, %c0_11, %c0_12] : memref<2x16x128xf32, #tpu.memory_space<vmem>>, vector<2x16x128xf32>
    %c0_i32 = arith.constant 0 : i32
    %c2_i32 = arith.constant 2 : i32
    %7 = arith.addi %c0_i32, %c2_i32 : i32
    %c1_i32 = arith.constant 1 : i32
    %8 = scf.for %arg20 = %c0_i32 to %7 step %c1_i32 iter_args(%arg21 = %6) -> (vector<2x16x128xf32>)  : i32 {
      %c0_27 = arith.constant 0 : index
      %c1 = arith.constant 1 : index
      %c0_28 = arith.constant 0 : index
      %25 = vector.load %arg16[%c0_27, %c1, %c0_28] : memref<2x18x128xf32, #tpu.memory_space<vmem>>, vector<2x16x128xf32>
      tpu.vector_store %arg16[%c0_27, %c1, %c0_28], %arg21 {strides = array<i32>} : memref<2x18x128xf32, #tpu.memory_space<vmem>>, vector<2x16x128xf32>,
      %cst_29 = arith.constant 0.000000e+00 : f32
      %26 = vector.broadcast %cst_29 : f32 to vector<32x128xf32>
      %c0_30 = arith.constant 0 : index
      %c0_31 = arith.constant 0 : index
      %c0_32 = arith.constant 0 : index
      %27 = vector.load %arg16[%c0_30, %c0_31, %c0_32] : memref<2x18x128xf32, #tpu.memory_space<vmem>>, vector<2x16x128xf32>
      %28 = vector.shape_cast %27 : vector<2x16x128xf32> to vector<32x128xf32>
      %c0_33 = arith.constant 0 : index
      %c0_34 = arith.constant 0 : index
      %c0_35 = arith.constant 0 : index
      %29 = vector.load %arg1[%c0_33, %c0_34, %c0_35] : memref<3x128x128xf32, #tpu.memory_space<vmem>>, vector<1x128x128xf32>
      %30 = vector.shape_cast %29 : vector<1x128x128xf32> to vector<128x128xf32>
      %cst_36 = arith.constant dense<0.000000e+00> : vector<32x128xf32>
      %31 = tpu.matmul %28, %30, %cst_36 {dimension_numbers = #tpu.dot_dimension_numbers<[1], [0], [0], [1], [0, 0, 1, 1], [], []>} : vector<32x128xf32>, vector<128x128xf32>, vector<32x128xf32> -> vector<32x128xf32>
      %32 = arith.addf %26, %31 : vector<32x128xf32>
      %c0_37 = arith.constant 0 : index
      %c1_38 = arith.constant 1 : index
      %c0_39 = arith.constant 0 : index
      %33 = vector.load %arg16[%c0_37, %c1_38, %c0_39] : memref<2x18x128xf32, #tpu.memory_space<vmem>>, vector<2x16x128xf32>
      %34 = vector.shape_cast %33 : vector<2x16x128xf32> to vector<32x128xf32>
      %c1_40 = arith.constant 1 : index
      %c0_41 = arith.constant 0 : index
      %c0_42 = arith.constant 0 : index
      %35 = vector.load %arg1[%c1_40, %c0_41, %c0_42] : memref<3x128x128xf32, #tpu.memory_space<vmem>>, vector<1x128x128xf32>
      %36 = vector.shape_cast %35 : vector<1x128x128xf32> to vector<128x128xf32>
      %cst_43 = arith.constant dense<0.000000e+00> : vector<32x128xf32>
      %37 = tpu.matmul %34, %36, %cst_43 {dimension_numbers = #tpu.dot_dimension_numbers<[1], [0], [0], [1], [0, 0, 1, 1], [], []>} : vector<32x128xf32>, vector<128x128xf32>, vector<32x128xf32> -> vector<32x128xf32>
      %38 = arith.addf %32, %37 : vector<32x128xf32>
      %c0_44 = arith.constant 0 : index
      %c2 = arith.constant 2 : index
      %c0_45 = arith.constant 0 : index
      %39 = vector.load %arg16[%c0_44, %c2, %c0_45] : memref<2x18x128xf32, #tpu.memory_space<vmem>>, vector<2x16x128xf32>
      %40 = vector.shape_cast %39 : vector<2x16x128xf32> to vector<32x128xf32>
      %c2_46 = arith.constant 2 : index
      %c0_47 = arith.constant 0 : index
      %c0_48 = arith.constant 0 : index
      %41 = vector.load %arg1[%c2_46, %c0_47, %c0_48] : memref<3x128x128xf32, #tpu.memory_space<vmem>>, vector<1x128x128xf32>
      %42 = vector.shape_cast %41 : vector<1x128x128xf32> to vector<128x128xf32>
      %cst_49 = arith.constant dense<0.000000e+00> : vector<32x128xf32>
      %43 = tpu.matmul %40, %42, %cst_49 {dimension_numbers = #tpu.dot_dimension_numbers<[1], [0], [0], [1], [0, 0, 1, 1], [], []>} : vector<32x128xf32>, vector<128x128xf32>, vector<32x128xf32> -> vector<32x128xf32>
      %44 = arith.addf %38, %43 : vector<32x128xf32>
      %c0_50 = arith.constant 0 : index
      %c0_51 = arith.constant 0 : index
      %45 = vector.load %arg3[%c0_50, %c0_51] : memref<1x128xf32, #tpu.memory_space<vmem>>, vector<1x128xf32>
      %c0_52 = arith.constant 0 : index
      %c0_53 = arith.constant 0 : index
      %46 = vector.load %arg4[%c0_52, %c0_53] : memref<1x128xf32, #tpu.memory_space<vmem>>, vector<1x128xf32>
      %cst_54 = arith.constant dense<0.000000e+00> : vector<128xf32>
      %47 = vector.multi_reduction <add>, %44, %cst_54 [0] : vector<32x128xf32> to vector<128xf32>
      %48 = vector.shape_cast %47 : vector<128xf32> to vector<1x128xf32>
      %c0_55 = arith.constant 0 : index
      %c0_56 = arith.constant 0 : index
      %49 = vector.load %arg7[%c0_55, %c0_56] : memref<128x128xf32, #tpu.memory_space<vmem>>, vector<128x128xf32>
      %cst_57 = arith.constant dense<0.000000e+00> : vector<1x128xf32>
      %50 = tpu.matmul %48, %49, %cst_57 {dimension_numbers = #tpu.dot_dimension_numbers<[1], [0], [0], [1], [0, 0, 1, 1], [], []>} : vector<1x128xf32>, vector<128x128xf32>, vector<1x128xf32> -> vector<1x128xf32>
      %51 = vector.broadcast %50 : vector<1x128xf32> to vector<32x128xf32>
      %52 = arith.subf %44, %51 : vector<32x128xf32>
      %53 = arith.mulf %52, %52 : vector<32x128xf32>
      %cst_58 = arith.constant dense<0.000000e+00> : vector<128xf32>
      %54 = vector.multi_reduction <add>, %53, %cst_58 [0] : vector<32x128xf32> to vector<128xf32>
      %55 = vector.shape_cast %54 : vector<128xf32> to vector<1x128xf32>
      %c0_59 = arith.constant 0 : index
      %c0_60 = arith.constant 0 : index
      %56 = vector.load %arg7[%c0_59, %c0_60] : memref<128x128xf32, #tpu.memory_space<vmem>>, vector<128x128xf32>
      %cst_61 = arith.constant dense<0.000000e+00> : vector<1x128xf32>
      %57 = tpu.matmul %55, %56, %cst_61 {dimension_numbers = #tpu.dot_dimension_numbers<[1], [0], [0], [1], [0, 0, 1, 1], [], []>} : vector<1x128xf32>, vector<128x128xf32>, vector<1x128xf32> -> vector<1x128xf32>
      %cst_62 = arith.constant 9.99999974E-6 : f32
      %58 = vector.broadcast %cst_62 : f32 to vector<1x128xf32>
      %59 = arith.addf %57, %58 : vector<1x128xf32>
      %60 = math.rsqrt %59 : vector<1x128xf32>
      %61 = arith.mulf %45, %60 : vector<1x128xf32>
      %62 = vector.broadcast %61 : vector<1x128xf32> to vector<32x128xf32>
      %63 = arith.mulf %52, %62 : vector<32x128xf32>
      %64 = vector.broadcast %46 : vector<1x128xf32> to vector<32x128xf32>
      %65 = arith.addf %63, %64 : vector<32x128xf32>
      %cst_63 = arith.constant 0.000000e+00 : f32
      %66 = vector.broadcast %cst_63 : f32 to vector<32x128xf32>
      %67 = arith.cmpf oge, %65, %66 : vector<32x128xf32>
      %cst_64 = arith.constant 0.00999999977 : f32
      %68 = vector.broadcast %cst_64 : f32 to vector<32x128xf32>
      %69 = arith.mulf %68, %65 : vector<32x128xf32>
      %70 = arith.select %67, %65, %69 : vector<32x128xi1>, vector<32x128xf32>
      %71 = vector.shape_cast %70 : vector<32x128xf32> to vector<2x16x128xf32>
      %c0_65 = arith.constant 0 : index
      %c0_66 = arith.constant 0 : index
      %c0_67 = arith.constant 0 : index
      %72 = vector.load %arg19[%c0_65, %c0_66, %c0_67] : memref<2x16x128xf32, #tpu.memory_space<vmem>>, vector<2x16x128xf32>
      tpu.vector_store %arg19[%c0_65, %c0_66, %c0_67], %71 {strides = array<i32>} : memref<2x16x128xf32, #tpu.memory_space<vmem>>, vector<2x16x128xf32>,
      %cst_68 = arith.constant dense<0.000000e+00> : vector<2x128xf32>
      %73 = vector.multi_reduction <add>, %71, %cst_68 [1] : vector<2x16x128xf32> to vector<2x128xf32>
      %cst_69 = arith.constant 1.600000e+01 : f32
      %74 = vector.broadcast %cst_69 : f32 to vector<2x128xf32>
      %75 = arith.divf %73, %74 : vector<2x128xf32>
      %cst_70 = arith.constant dense<0xFF800000> : vector<2x128xf32>
      %76 = vector.multi_reduction <maximumf>, %71, %cst_70 [1] : vector<2x16x128xf32> to vector<2x128xf32>
      %77 = vector.extract_strided_slice %75 {offsets = [0, 0], sizes = [2, 16], strides = [1, 1]} : vector<2x128xf32> to vector<2x16xf32>
      %cst_71 = arith.constant dense<0.000000e+00> : vector<2xf32>
      %78 = vector.multi_reduction <add>, %77, %cst_71 [1] : vector<2x16xf32> to vector<2xf32>
      %79 = vector.shape_cast %78 : vector<2xf32> to vector<2x1xf32>
      %cst_72 = arith.constant 1.600000e+01 : f32
      %80 = vector.broadcast %cst_72 : f32 to vector<2x1xf32>
      %81 = arith.divf %79, %80 : vector<2x1xf32>
      %82 = vector.extract_strided_slice %75 {offsets = [0, 16], sizes = [2, 16], strides = [1, 1]} : vector<2x128xf32> to vector<2x16xf32>
      %cst_73 = arith.constant dense<0.000000e+00> : vector<2xf32>
      %83 = vector.multi_reduction <add>, %82, %cst_73 [1] : vector<2x16xf32> to vector<2xf32>
      %84 = vector.shape_cast %83 : vector<2xf32> to vector<2x1xf32>
      %cst_74 = arith.constant 1.600000e+01 : f32
      %85 = vector.broadcast %cst_74 : f32 to vector<2x1xf32>
      %86 = arith.divf %84, %85 : vector<2x1xf32>
      %87 = vector.extract_strided_slice %75 {offsets = [0, 32], sizes = [2, 16], strides = [1, 1]} : vector<2x128xf32> to vector<2x16xf32>
      %cst_75 = arith.constant dense<0.000000e+00> : vector<2xf32>
      %88 = vector.multi_reduction <add>, %87, %cst_75 [1] : vector<2x16xf32> to vector<2xf32>
      %89 = vector.shape_cast %88 : vector<2xf32> to vector<2x1xf32>
      %cst_76 = arith.constant 1.600000e+01 : f32
      %90 = vector.broadcast %cst_76 : f32 to vector<2x1xf32>
      %91 = arith.divf %89, %90 : vector<2x1xf32>
      %92 = vector.extract_strided_slice %75 {offsets = [0, 48], sizes = [2, 16], strides = [1, 1]} : vector<2x128xf32> to vector<2x16xf32>
      %cst_77 = arith.constant dense<0.000000e+00> : vector<2xf32>
      %93 = vector.multi_reduction <add>, %92, %cst_77 [1] : vector<2x16xf32> to vector<2xf32>
      %94 = vector.shape_cast %93 : vector<2xf32> to vector<2x1xf32>
      %cst_78 = arith.constant 1.600000e+01 : f32
      %95 = vector.broadcast %cst_78 : f32 to vector<2x1xf32>
      %96 = arith.divf %94, %95 : vector<2x1xf32>
      %97 = vector.extract_strided_slice %75 {offsets = [0, 64], sizes = [2, 16], strides = [1, 1]} : vector<2x128xf32> to vector<2x16xf32>
      %cst_79 = arith.constant dense<0.000000e+00> : vector<2xf32>
      %98 = vector.multi_reduction <add>, %97, %cst_79 [1] : vector<2x16xf32> to vector<2xf32>
      %99 = vector.shape_cast %98 : vector<2xf32> to vector<2x1xf32>
      %cst_80 = arith.constant 1.600000e+01 : f32
      %100 = vector.broadcast %cst_80 : f32 to vector<2x1xf32>
      %101 = arith.divf %99, %100 : vector<2x1xf32>
      %102 = vector.extract_strided_slice %75 {offsets = [0, 80], sizes = [2, 16], strides = [1, 1]} : vector<2x128xf32> to vector<2x16xf32>
      %cst_81 = arith.constant dense<0.000000e+00> : vector<2xf32>
      %103 = vector.multi_reduction <add>, %102, %cst_81 [1] : vector<2x16xf32> to vector<2xf32>
      %104 = vector.shape_cast %103 : vector<2xf32> to vector<2x1xf32>
      %cst_82 = arith.constant 1.600000e+01 : f32
      %105 = vector.broadcast %cst_82 : f32 to vector<2x1xf32>
      %106 = arith.divf %104, %105 : vector<2x1xf32>
      %107 = vector.extract_strided_slice %75 {offsets = [0, 96], sizes = [2, 16], strides = [1, 1]} : vector<2x128xf32> to vector<2x16xf32>
      %cst_83 = arith.constant dense<0.000000e+00> : vector<2xf32>
      %108 = vector.multi_reduction <add>, %107, %cst_83 [1] : vector<2x16xf32> to vector<2xf32>
      %109 = vector.shape_cast %108 : vector<2xf32> to vector<2x1xf32>
      %cst_84 = arith.constant 1.600000e+01 : f32
      %110 = vector.broadcast %cst_84 : f32 to vector<2x1xf32>
      %111 = arith.divf %109, %110 : vector<2x1xf32>
      %112 = vector.extract_strided_slice %75 {offsets = [0, 112], sizes = [2, 16], strides = [1, 1]} : vector<2x128xf32> to vector<2x16xf32>
      %cst_85 = arith.constant dense<0.000000e+00> : vector<2xf32>
      %113 = vector.multi_reduction <add>, %112, %cst_85 [1] : vector<2x16xf32> to vector<2xf32>
      %114 = vector.shape_cast %113 : vector<2xf32> to vector<2x1xf32>
      %cst_86 = arith.constant 1.600000e+01 : f32
      %115 = vector.broadcast %cst_86 : f32 to vector<2x1xf32>
      %116 = arith.divf %114, %115 : vector<2x1xf32>
      %117 = tpu.concatenate %81, %86, %91, %96, %101, %106, %111, %116 in 1 : vector<2x1xf32>, vector<2x1xf32>, vector<2x1xf32>, vector<2x1xf32>, vector<2x1xf32>, vector<2x1xf32>, vector<2x1xf32>, vector<2x1xf32> -> vector<2x8xf32>
      %118 = vector.extract_strided_slice %76 {offsets = [0, 0], sizes = [2, 16], strides = [1, 1]} : vector<2x128xf32> to vector<2x16xf32>
      %cst_87 = arith.constant dense<0xFF800000> : vector<2xf32>
      %119 = vector.multi_reduction <maximumf>, %118, %cst_87 [1] : vector<2x16xf32> to vector<2xf32>
      %120 = vector.shape_cast %119 : vector<2xf32> to vector<2x1xf32>
      %121 = vector.extract_strided_slice %76 {offsets = [0, 16], sizes = [2, 16], strides = [1, 1]} : vector<2x128xf32> to vector<2x16xf32>
      %cst_88 = arith.constant dense<0xFF800000> : vector<2xf32>
      %122 = vector.multi_reduction <maximumf>, %121, %cst_88 [1] : vector<2x16xf32> to vector<2xf32>
      %123 = vector.shape_cast %122 : vector<2xf32> to vector<2x1xf32>
      %124 = vector.extract_strided_slice %76 {offsets = [0, 32], sizes = [2, 16], strides = [1, 1]} : vector<2x128xf32> to vector<2x16xf32>
      %cst_89 = arith.constant dense<0xFF800000> : vector<2xf32>
      %125 = vector.multi_reduction <maximumf>, %124, %cst_89 [1] : vector<2x16xf32> to vector<2xf32>
      %126 = vector.shape_cast %125 : vector<2xf32> to vector<2x1xf32>
      %127 = vector.extract_strided_slice %76 {offsets = [0, 48], sizes = [2, 16], strides = [1, 1]} : vector<2x128xf32> to vector<2x16xf32>
      %cst_90 = arith.constant dense<0xFF800000> : vector<2xf32>
      %128 = vector.multi_reduction <maximumf>, %127, %cst_90 [1] : vector<2x16xf32> to vector<2xf32>
      %129 = vector.shape_cast %128 : vector<2xf32> to vector<2x1xf32>
      %130 = vector.extract_strided_slice %76 {offsets = [0, 64], sizes = [2, 16], strides = [1, 1]} : vector<2x128xf32> to vector<2x16xf32>
      %cst_91 = arith.constant dense<0xFF800000> : vector<2xf32>
      %131 = vector.multi_reduction <maximumf>, %130, %cst_91 [1] : vector<2x16xf32> to vector<2xf32>
      %132 = vector.shape_cast %131 : vector<2xf32> to vector<2x1xf32>
      %133 = vector.extract_strided_slice %76 {offsets = [0, 80], sizes = [2, 16], strides = [1, 1]} : vector<2x128xf32> to vector<2x16xf32>
      %cst_92 = arith.constant dense<0xFF800000> : vector<2xf32>
      %134 = vector.multi_reduction <maximumf>, %133, %cst_92 [1] : vector<2x16xf32> to vector<2xf32>
      %135 = vector.shape_cast %134 : vector<2xf32> to vector<2x1xf32>
      %136 = vector.extract_strided_slice %76 {offsets = [0, 96], sizes = [2, 16], strides = [1, 1]} : vector<2x128xf32> to vector<2x16xf32>
      %cst_93 = arith.constant dense<0xFF800000> : vector<2xf32>
      %137 = vector.multi_reduction <maximumf>, %136, %cst_93 [1] : vector<2x16xf32> to vector<2xf32>
      %138 = vector.shape_cast %137 : vector<2xf32> to vector<2x1xf32>
      %139 = vector.extract_strided_slice %76 {offsets = [0, 112], sizes = [2, 16], strides = [1, 1]} : vector<2x128xf32> to vector<2x16xf32>
      %cst_94 = arith.constant dense<0xFF800000> : vector<2xf32>
      %140 = vector.multi_reduction <maximumf>, %139, %cst_94 [1] : vector<2x16xf32> to vector<2xf32>
      %141 = vector.shape_cast %140 : vector<2xf32> to vector<2x1xf32>
      %142 = tpu.concatenate %120, %123, %126, %129, %132, %135, %138, %141 in 1 : vector<2x1xf32>, vector<2x1xf32>, vector<2x1xf32>, vector<2x1xf32>, vector<2x1xf32>, vector<2x1xf32>, vector<2x1xf32>, vector<2x1xf32> -> vector<2x8xf32>
      %143 = tpu.concatenate %117, %142 in 0 : vector<2x8xf32>, vector<2x8xf32> -> vector<4x8xf32>
      %c0_95 = arith.constant 0 : index
      %c0_96 = arith.constant 0 : index
      %144 = vector.load %arg8[%c0_95, %c0_96] : memref<8x4xf32, #tpu.memory_space<vmem>>, vector<8x4xf32>
      %cst_97 = arith.constant dense<0.000000e+00> : vector<4x4xf32>
      %145 = tpu.matmul %143, %144, %cst_97 {dimension_numbers = #tpu.dot_dimension_numbers<[1], [0], [0], [1], [0, 0, 1, 1], [], []>} : vector<4x8xf32>, vector<8x4xf32>, vector<4x4xf32> -> vector<4x4xf32>
      %cst_98 = arith.constant 0.000000e+00 : f32
      %146 = vector.broadcast %cst_98 : f32 to vector<4x4xf32>
      %147 = arith.maximumf %145, %146 : vector<4x4xf32>
      %c0_99 = arith.constant 0 : index
      %c0_100 = arith.constant 0 : index
      %148 = vector.load %arg9[%c0_99, %c0_100] : memref<4x8xf32, #tpu.memory_space<vmem>>, vector<4x8xf32>
      %cst_101 = arith.constant dense<0.000000e+00> : vector<4x8xf32>
      %149 = tpu.matmul %147, %148, %cst_101 {dimension_numbers = #tpu.dot_dimension_numbers<[1], [0], [0], [1], [0, 0, 1, 1], [], []>} : vector<4x4xf32>, vector<4x8xf32>, vector<4x8xf32> -> vector<4x8xf32>
      %150 = vector.extract_strided_slice %149 {offsets = [0, 0], sizes = [2, 8], strides = [1, 1]} : vector<4x8xf32> to vector<2x8xf32>
      %151 = vector.extract_strided_slice %149 {offsets = [2, 0], sizes = [2, 8], strides = [1, 1]} : vector<4x8xf32> to vector<2x8xf32>
      %152 = arith.addf %150, %151 : vector<2x8xf32>
      %cst_102 = arith.constant 0.000000e+00 : f32
      %153 = vector.broadcast %cst_102 : f32 to vector<2x8xf32>
      %154 = arith.subf %153, %152 : vector<2x8xf32>
      %155 = math.exp %154 : vector<2x8xf32>
      %cst_103 = arith.constant 1.000000e+00 : f32
      %156 = vector.broadcast %cst_103 : f32 to vector<2x8xf32>
      %157 = arith.addf %156, %155 : vector<2x8xf32>
      %cst_104 = arith.constant 1.000000e+00 : f32
      %158 = vector.broadcast %cst_104 : f32 to vector<2x8xf32>
      %159 = arith.divf %158, %157 : vector<2x8xf32>
      %c0_105 = arith.constant 0 : index
      %c0_106 = arith.constant 0 : index
      %160 = vector.load %arg10[%c0_105, %c0_106] : memref<8x128xf32, #tpu.memory_space<vmem>>, vector<8x128xf32>
      %cst_107 = arith.constant dense<0.000000e+00> : vector<2x128xf32>
      %161 = tpu.matmul %159, %160, %cst_107 {dimension_numbers = #tpu.dot_dimension_numbers<[1], [0], [0], [1], [0, 0, 1, 1], [], []>} : vector<2x8xf32>, vector<8x128xf32>, vector<2x128xf32> -> vector<2x128xf32>
      %c0_108 = arith.constant 0 : index
      %c0_109 = arith.constant 0 : index
      %c0_110 = arith.constant 0 : index
      %162 = vector.load %arg19[%c0_108, %c0_109, %c0_110] : memref<2x16x128xf32, #tpu.memory_space<vmem>>, vector<2x16x128xf32>
      %163 = vector.shape_cast %161 : vector<2x128xf32> to vector<2x1x128xf32>
      %164 = vector.broadcast %163 : vector<2x1x128xf32> to vector<2x16x128xf32>
      %165 = arith.mulf %162, %164 : vector<2x16x128xf32>
      %166 = vector.extract_strided_slice %165 {offsets = [0, 0, 0], sizes = [2, 16, 16], strides = [1, 1, 1]} : vector<2x16x128xf32> to vector<2x16x16xf32>
      %167 = vector.extract_strided_slice %165 {offsets = [0, 0, 0], sizes = [2, 16, 16], strides = [1, 1, 1]} : vector<2x16x128xf32> to vector<2x16x16xf32>
      %168 = vector.extract_strided_slice %165 {offsets = [0, 0, 16], sizes = [2, 16, 16], strides = [1, 1, 1]} : vector<2x16x128xf32> to vector<2x16x16xf32>
      %169 = arith.maximumf %166, %168 : vector<2x16x16xf32>
      %170 = arith.addf %167, %168 : vector<2x16x16xf32>
      %171 = vector.extract_strided_slice %165 {offsets = [0, 0, 32], sizes = [2, 16, 16], strides = [1, 1, 1]} : vector<2x16x128xf32> to vector<2x16x16xf32>
      %172 = arith.maximumf %169, %171 : vector<2x16x16xf32>
      %173 = arith.addf %170, %171 : vector<2x16x16xf32>
      %174 = vector.extract_strided_slice %165 {offsets = [0, 0, 48], sizes = [2, 16, 16], strides = [1, 1, 1]} : vector<2x16x128xf32> to vector<2x16x16xf32>
      %175 = arith.maximumf %172, %174 : vector<2x16x16xf32>
      %176 = arith.addf %173, %174 : vector<2x16x16xf32>
      %177 = vector.extract_strided_slice %165 {offsets = [0, 0, 64], sizes = [2, 16, 16], strides = [1, 1, 1]} : vector<2x16x128xf32> to vector<2x16x16xf32>
      %178 = arith.maximumf %175, %177 : vector<2x16x16xf32>
      %179 = arith.addf %176, %177 : vector<2x16x16xf32>
      %180 = vector.extract_strided_slice %165 {offsets = [0, 0, 80], sizes = [2, 16, 16], strides = [1, 1, 1]} : vector<2x16x128xf32> to vector<2x16x16xf32>
      %181 = arith.maximumf %178, %180 : vector<2x16x16xf32>
      %182 = arith.addf %179, %180 : vector<2x16x16xf32>
      %183 = vector.extract_strided_slice %165 {offsets = [0, 0, 96], sizes = [2, 16, 16], strides = [1, 1, 1]} : vector<2x16x128xf32> to vector<2x16x16xf32>
      %184 = arith.maximumf %181, %183 : vector<2x16x16xf32>
      %185 = arith.addf %182, %183 : vector<2x16x16xf32>
      %186 = vector.extract_strided_slice %165 {offsets = [0, 0, 112], sizes = [2, 16, 16], strides = [1, 1, 1]} : vector<2x16x128xf32> to vector<2x16x16xf32>
      %187 = arith.maximumf %184, %186 : vector<2x16x16xf32>
      %188 = arith.addf %185, %186 : vector<2x16x16xf32>
      %cst_111 = arith.constant 1.250000e-01 : f32
      %189 = vector.broadcast %cst_111 : f32 to vector<2x16x16xf32>
      %190 = arith.mulf %188, %189 : vector<2x16x16xf32>
      %c0_112 = arith.constant 0 : index
      %c3 = arith.constant 3 : index
      %c0_113 = arith.constant 0 : index
      %191 = vector.load %arg18[%c0_112, %c3, %c0_113] : memref<2x22x32xf32, #tpu.memory_space<vmem>>, vector<2x16x16xf32>
      tpu.vector_store %arg18[%c0_112, %c3, %c0_113], %190 {strides = array<i32>} : memref<2x22x32xf32, #tpu.memory_space<vmem>>, vector<2x16x16xf32>,
      %c0_114 = arith.constant 0 : index
      %c3_115 = arith.constant 3 : index
      %c16 = arith.constant 16 : index
      %192 = vector.load %arg18[%c0_114, %c3_115, %c16] : memref<2x22x32xf32, #tpu.memory_space<vmem>>, vector<2x16x16xf32>
      tpu.vector_store %arg18[%c0_114, %c3_115, %c16], %187 {strides = array<i32>} : memref<2x22x32xf32, #tpu.memory_space<vmem>>, vector<2x16x16xf32>,
      %cst_116 = arith.constant 0.000000e+00 : f32
      %193 = vector.broadcast %cst_116 : f32 to vector<32x128xf32>
      %c0_117 = arith.constant 0 : index
      %c0_118 = arith.constant 0 : index
      %c0_119 = arith.constant 0 : index
      %194 = vector.load %arg18[%c0_117, %c0_118, %c0_119] : memref<2x22x32xf32, #tpu.memory_space<vmem>>, vector<2x16x32xf32>
      %195 = vector.shape_cast %194 : vector<2x16x32xf32> to vector<32x32xf32>
      %c0_120 = arith.constant 0 : index
      %c0_121 = arith.constant 0 : index
      %c0_122 = arith.constant 0 : index
      %196 = vector.load %arg11[%c0_120, %c0_121, %c0_122] : memref<7x32x128xf32, #tpu.memory_space<vmem>>, vector<1x32x128xf32>
      %197 = vector.shape_cast %196 : vector<1x32x128xf32> to vector<32x128xf32>
      %cst_123 = arith.constant dense<0.000000e+00> : vector<32x128xf32>
      %198 = tpu.matmul %195, %197, %cst_123 {dimension_numbers = #tpu.dot_dimension_numbers<[1], [0], [0], [1], [0, 0, 1, 1], [], []>} : vector<32x32xf32>, vector<32x128xf32>, vector<32x128xf32> -> vector<32x128xf32>
      %199 = arith.addf %193, %198 : vector<32x128xf32>
      %c0_124 = arith.constant 0 : index
      %c1_125 = arith.constant 1 : index
      %c0_126 = arith.constant 0 : index
      %200 = vector.load %arg18[%c0_124, %c1_125, %c0_126] : memref<2x22x32xf32, #tpu.memory_space<vmem>>, vector<2x16x32xf32>
      %201 = vector.shape_cast %200 : vector<2x16x32xf32> to vector<32x32xf32>
      %c1_127 = arith.constant 1 : index
      %c0_128 = arith.constant 0 : index
      %c0_129 = arith.constant 0 : index
      %202 = vector.load %arg11[%c1_127, %c0_128, %c0_129] : memref<7x32x128xf32, #tpu.memory_space<vmem>>, vector<1x32x128xf32>
      %203 = vector.shape_cast %202 : vector<1x32x128xf32> to vector<32x128xf32>
      %cst_130 = arith.constant dense<0.000000e+00> : vector<32x128xf32>
      %204 = tpu.matmul %201, %203, %cst_130 {dimension_numbers = #tpu.dot_dimension_numbers<[1], [0], [0], [1], [0, 0, 1, 1], [], []>} : vector<32x32xf32>, vector<32x128xf32>, vector<32x128xf32> -> vector<32x128xf32>
      %205 = arith.addf %199, %204 : vector<32x128xf32>
      %c0_131 = arith.constant 0 : index
      %c2_132 = arith.constant 2 : index
      %c0_133 = arith.constant 0 : index
      %206 = vector.load %arg18[%c0_131, %c2_132, %c0_133] : memref<2x22x32xf32, #tpu.memory_space<vmem>>, vector<2x16x32xf32>
      %207 = vector.shape_cast %206 : vector<2x16x32xf32> to vector<32x32xf32>
      %c2_134 = arith.constant 2 : index
      %c0_135 = arith.constant 0 : index
      %c0_136 = arith.constant 0 : index
      %208 = vector.load %arg11[%c2_134, %c0_135, %c0_136] : memref<7x32x128xf32, #tpu.memory_space<vmem>>, vector<1x32x128xf32>
      %209 = vector.shape_cast %208 : vector<1x32x128xf32> to vector<32x128xf32>
      %cst_137 = arith.constant dense<0.000000e+00> : vector<32x128xf32>
      %210 = tpu.matmul %207, %209, %cst_137 {dimension_numbers = #tpu.dot_dimension_numbers<[1], [0], [0], [1], [0, 0, 1, 1], [], []>} : vector<32x32xf32>, vector<32x128xf32>, vector<32x128xf32> -> vector<32x128xf32>
      %211 = arith.addf %205, %210 : vector<32x128xf32>
      %c0_138 = arith.constant 0 : index
      %c3_139 = arith.constant 3 : index
      %c0_140 = arith.constant 0 : index
      %212 = vector.load %arg18[%c0_138, %c3_139, %c0_140] : memref<2x22x32xf32, #tpu.memory_space<vmem>>, vector<2x16x32xf32>
      %213 = vector.shape_cast %212 : vector<2x16x32xf32> to vector<32x32xf32>
      %c3_141 = arith.constant 3 : index
      %c0_142 = arith.constant 0 : index
      %c0_143 = arith.constant 0 : index
      %214 = vector.load %arg11[%c3_141, %c0_142, %c0_143] : memref<7x32x128xf32, #tpu.memory_space<vmem>>, vector<1x32x128xf32>
      %215 = vector.shape_cast %214 : vector<1x32x128xf32> to vector<32x128xf32>
      %cst_144 = arith.constant dense<0.000000e+00> : vector<32x128xf32>
      %216 = tpu.matmul %213, %215, %cst_144 {dimension_numbers = #tpu.dot_dimension_numbers<[1], [0], [0], [1], [0, 0, 1, 1], [], []>} : vector<32x32xf32>, vector<32x128xf32>, vector<32x128xf32> -> vector<32x128xf32>
      %217 = arith.addf %211, %216 : vector<32x128xf32>
      %c0_145 = arith.constant 0 : index
      %c4 = arith.constant 4 : index
      %c0_146 = arith.constant 0 : index
      %218 = vector.load %arg18[%c0_145, %c4, %c0_146] : memref<2x22x32xf32, #tpu.memory_space<vmem>>, vector<2x16x32xf32>
      %219 = vector.shape_cast %218 : vector<2x16x32xf32> to vector<32x32xf32>
      %c4_147 = arith.constant 4 : index
      %c0_148 = arith.constant 0 : index
      %c0_149 = arith.constant 0 : index
      %220 = vector.load %arg11[%c4_147, %c0_148, %c0_149] : memref<7x32x128xf32, #tpu.memory_space<vmem>>, vector<1x32x128xf32>
      %221 = vector.shape_cast %220 : vector<1x32x128xf32> to vector<32x128xf32>
      %cst_150 = arith.constant dense<0.000000e+00> : vector<32x128xf32>
      %222 = tpu.matmul %219, %221, %cst_150 {dimension_numbers = #tpu.dot_dimension_numbers<[1], [0], [0], [1], [0, 0, 1, 1], [], []>} : vector<32x32xf32>, vector<32x128xf32>, vector<32x128xf32> -> vector<32x128xf32>
      %223 = arith.addf %217, %222 : vector<32x128xf32>
      %c0_151 = arith.constant 0 : index
      %c5 = arith.constant 5 : index
      %c0_152 = arith.constant 0 : index
      %224 = vector.load %arg18[%c0_151, %c5, %c0_152] : memref<2x22x32xf32, #tpu.memory_space<vmem>>, vector<2x16x32xf32>
      %225 = vector.shape_cast %224 : vector<2x16x32xf32> to vector<32x32xf32>
      %c5_153 = arith.constant 5 : index
      %c0_154 = arith.constant 0 : index
      %c0_155 = arith.constant 0 : index
      %226 = vector.load %arg11[%c5_153, %c0_154, %c0_155] : memref<7x32x128xf32, #tpu.memory_space<vmem>>, vector<1x32x128xf32>
      %227 = vector.shape_cast %226 : vector<1x32x128xf32> to vector<32x128xf32>
      %cst_156 = arith.constant dense<0.000000e+00> : vector<32x128xf32>
      %228 = tpu.matmul %225, %227, %cst_156 {dimension_numbers = #tpu.dot_dimension_numbers<[1], [0], [0], [1], [0, 0, 1, 1], [], []>} : vector<32x32xf32>, vector<32x128xf32>, vector<32x128xf32> -> vector<32x128xf32>
      %229 = arith.addf %223, %228 : vector<32x128xf32>
      %c0_157 = arith.constant 0 : index
      %c6 = arith.constant 6 : index
      %c0_158 = arith.constant 0 : index
      %230 = vector.load %arg18[%c0_157, %c6, %c0_158] : memref<2x22x32xf32, #tpu.memory_space<vmem>>, vector<2x16x32xf32>
      %231 = vector.shape_cast %230 : vector<2x16x32xf32> to vector<32x32xf32>
      %c6_159 = arith.constant 6 : index
      %c0_160 = arith.constant 0 : index
      %c0_161 = arith.constant 0 : index
      %232 = vector.load %arg11[%c6_159, %c0_160, %c0_161] : memref<7x32x128xf32, #tpu.memory_space<vmem>>, vector<1x32x128xf32>
      %233 = vector.shape_cast %232 : vector<1x32x128xf32> to vector<32x128xf32>
      %cst_162 = arith.constant dense<0.000000e+00> : vector<32x128xf32>
      %234 = tpu.matmul %231, %233, %cst_162 {dimension_numbers = #tpu.dot_dimension_numbers<[1], [0], [0], [1], [0, 0, 1, 1], [], []>} : vector<32x32xf32>, vector<32x128xf32>, vector<32x128xf32> -> vector<32x128xf32>
      %235 = arith.addf %229, %234 : vector<32x128xf32>
      %cst_163 = arith.constant 0.000000e+00 : f32
      %236 = vector.broadcast %cst_163 : f32 to vector<32x128xf32>
      %237 = arith.subf %236, %235 : vector<32x128xf32>
      %238 = math.exp %237 : vector<32x128xf32>
      %cst_164 = arith.constant 1.000000e+00 : f32
      %239 = vector.broadcast %cst_164 : f32 to vector<32x128xf32>
      %240 = arith.addf %239, %238 : vector<32x128xf32>
      %cst_165 = arith.constant 1.000000e+00 : f32
      %241 = vector.broadcast %cst_165 : f32 to vector<32x128xf32>
      %242 = arith.divf %241, %240 : vector<32x128xf32>
      %243 = vector.shape_cast %242 : vector<32x128xf32> to vector<2x16x128xf32>
      %244 = arith.mulf %165, %243 : vector<2x16x128xf32>
      %c0_166 = arith.constant 0 : index
      %c1_167 = arith.constant 1 : index
      %c0_168 = arith.constant 0 : index
      %245 = vector.load %arg17[%c0_166, %c1_167, %c0_168] : memref<2x18x128xf32, #tpu.memory_space<vmem>>, vector<2x16x128xf32>
      tpu.vector_store %arg17[%c0_166, %c1_167, %c0_168], %244 {strides = array<i32>} : memref<2x18x128xf32, #tpu.memory_space<vmem>>, vector<2x16x128xf32>,
      %cst_169 = arith.constant 0.000000e+00 : f32
      %246 = vector.broadcast %cst_169 : f32 to vector<32x128xf32>
      %c0_170 = arith.constant 0 : index
      %c0_171 = arith.constant 0 : index
      %c0_172 = arith.constant 0 : index
      %247 = vector.load %arg17[%c0_170, %c0_171, %c0_172] : memref<2x18x128xf32, #tpu.memory_space<vmem>>, vector<2x16x128xf32>
      %248 = vector.shape_cast %247 : vector<2x16x128xf32> to vector<32x128xf32>
      %c0_173 = arith.constant 0 : index
      %c0_174 = arith.constant 0 : index
      %c0_175 = arith.constant 0 : index
      %249 = vector.load %arg2[%c0_173, %c0_174, %c0_175] : memref<3x128x128xf32, #tpu.memory_space<vmem>>, vector<1x128x128xf32>
      %250 = vector.shape_cast %249 : vector<1x128x128xf32> to vector<128x128xf32>
      %cst_176 = arith.constant dense<0.000000e+00> : vector<32x128xf32>
      %251 = tpu.matmul %248, %250, %cst_176 {dimension_numbers = #tpu.dot_dimension_numbers<[1], [0], [0], [1], [0, 0, 1, 1], [], []>} : vector<32x128xf32>, vector<128x128xf32>, vector<32x128xf32> -> vector<32x128xf32>
      %252 = arith.addf %246, %251 : vector<32x128xf32>
      %c0_177 = arith.constant 0 : index
      %c1_178 = arith.constant 1 : index
      %c0_179 = arith.constant 0 : index
      %253 = vector.load %arg17[%c0_177, %c1_178, %c0_179] : memref<2x18x128xf32, #tpu.memory_space<vmem>>, vector<2x16x128xf32>
      %254 = vector.shape_cast %253 : vector<2x16x128xf32> to vector<32x128xf32>
      %c1_180 = arith.constant 1 : index
      %c0_181 = arith.constant 0 : index
      %c0_182 = arith.constant 0 : index
      %255 = vector.load %arg2[%c1_180, %c0_181, %c0_182] : memref<3x128x128xf32, #tpu.memory_space<vmem>>, vector<1x128x128xf32>
      %256 = vector.shape_cast %255 : vector<1x128x128xf32> to vector<128x128xf32>
      %cst_183 = arith.constant dense<0.000000e+00> : vector<32x128xf32>
      %257 = tpu.matmul %254, %256, %cst_183 {dimension_numbers = #tpu.dot_dimension_numbers<[1], [0], [0], [1], [0, 0, 1, 1], [], []>} : vector<32x128xf32>, vector<128x128xf32>, vector<32x128xf32> -> vector<32x128xf32>
      %258 = arith.addf %252, %257 : vector<32x128xf32>
      %c0_184 = arith.constant 0 : index
      %c2_185 = arith.constant 2 : index
      %c0_186 = arith.constant 0 : index
      %259 = vector.load %arg17[%c0_184, %c2_185, %c0_186] : memref<2x18x128xf32, #tpu.memory_space<vmem>>, vector<2x16x128xf32>
      %260 = vector.shape_cast %259 : vector<2x16x128xf32> to vector<32x128xf32>
      %c2_187 = arith.constant 2 : index
      %c0_188 = arith.constant 0 : index
      %c0_189 = arith.constant 0 : index
      %261 = vector.load %arg2[%c2_187, %c0_188, %c0_189] : memref<3x128x128xf32, #tpu.memory_space<vmem>>, vector<1x128x128xf32>
      %262 = vector.shape_cast %261 : vector<1x128x128xf32> to vector<128x128xf32>
      %cst_190 = arith.constant dense<0.000000e+00> : vector<32x128xf32>
      %263 = tpu.matmul %260, %262, %cst_190 {dimension_numbers = #tpu.dot_dimension_numbers<[1], [0], [0], [1], [0, 0, 1, 1], [], []>} : vector<32x128xf32>, vector<128x128xf32>, vector<32x128xf32> -> vector<32x128xf32>
      %264 = arith.addf %258, %263 : vector<32x128xf32>
      %c0_191 = arith.constant 0 : index
      %c0_192 = arith.constant 0 : index
      %265 = vector.load %arg5[%c0_191, %c0_192] : memref<1x128xf32, #tpu.memory_space<vmem>>, vector<1x128xf32>
      %c0_193 = arith.constant 0 : index
      %c0_194 = arith.constant 0 : index
      %266 = vector.load %arg6[%c0_193, %c0_194] : memref<1x128xf32, #tpu.memory_space<vmem>>, vector<1x128xf32>
      %cst_195 = arith.constant dense<0.000000e+00> : vector<128xf32>
      %267 = vector.multi_reduction <add>, %264, %cst_195 [0] : vector<32x128xf32> to vector<128xf32>
      %268 = vector.shape_cast %267 : vector<128xf32> to vector<1x128xf32>
      %c0_196 = arith.constant 0 : index
      %c0_197 = arith.constant 0 : index
      %269 = vector.load %arg7[%c0_196, %c0_197] : memref<128x128xf32, #tpu.memory_space<vmem>>, vector<128x128xf32>
      %cst_198 = arith.constant dense<0.000000e+00> : vector<1x128xf32>
      %270 = tpu.matmul %268, %269, %cst_198 {dimension_numbers = #tpu.dot_dimension_numbers<[1], [0], [0], [1], [0, 0, 1, 1], [], []>} : vector<1x128xf32>, vector<128x128xf32>, vector<1x128xf32> -> vector<1x128xf32>
      %271 = vector.broadcast %270 : vector<1x128xf32> to vector<32x128xf32>
      %272 = arith.subf %264, %271 : vector<32x128xf32>
      %273 = arith.mulf %272, %272 : vector<32x128xf32>
      %cst_199 = arith.constant dense<0.000000e+00> : vector<128xf32>
      %274 = vector.multi_reduction <add>, %273, %cst_199 [0] : vector<32x128xf32> to vector<128xf32>
      %275 = vector.shape_cast %274 : vector<128xf32> to vector<1x128xf32>
      %c0_200 = arith.constant 0 : index
      %c0_201 = arith.constant 0 : index
      %276 = vector.load %arg7[%c0_200, %c0_201] : memref<128x128xf32, #tpu.memory_space<vmem>>, vector<128x128xf32>
      %cst_202 = arith.constant dense<0.000000e+00> : vector<1x128xf32>
      %277 = tpu.matmul %275, %276, %cst_202 {dimension_numbers = #tpu.dot_dimension_numbers<[1], [0], [0], [1], [0, 0, 1, 1], [], []>} : vector<1x128xf32>, vector<128x128xf32>, vector<1x128xf32> -> vector<1x128xf32>
      %cst_203 = arith.constant 9.99999974E-6 : f32
      %278 = vector.broadcast %cst_203 : f32 to vector<1x128xf32>
      %279 = arith.addf %277, %278 : vector<1x128xf32>
      %280 = math.rsqrt %279 : vector<1x128xf32>
      %281 = arith.mulf %265, %280 : vector<1x128xf32>
      %282 = vector.broadcast %281 : vector<1x128xf32> to vector<32x128xf32>
      %283 = arith.mulf %272, %282 : vector<32x128xf32>
      %284 = vector.broadcast %266 : vector<1x128xf32> to vector<32x128xf32>
      %285 = arith.addf %283, %284 : vector<32x128xf32>
      %cst_204 = arith.constant 0.000000e+00 : f32
      %286 = vector.broadcast %cst_204 : f32 to vector<32x128xf32>
      %287 = arith.cmpf oge, %285, %286 : vector<32x128xf32>
      %cst_205 = arith.constant 0.00999999977 : f32
      %288 = vector.broadcast %cst_205 : f32 to vector<32x128xf32>
      %289 = arith.mulf %288, %285 : vector<32x128xf32>
      %290 = arith.select %287, %285, %289 : vector<32x128xi1>, vector<32x128xf32>
      %291 = vector.shape_cast %290 : vector<32x128xf32> to vector<2x16x128xf32>
      %c0_206 = arith.constant 0 : index
      %c0_207 = arith.constant 0 : index
      %c0_208 = arith.constant 0 : index
      %292 = vector.load %arg19[%c0_206, %c0_207, %c0_208] : memref<2x16x128xf32, #tpu.memory_space<vmem>>, vector<2x16x128xf32>
      %293 = arith.addf %292, %291 : vector<2x16x128xf32>
      scf.yield %293 : vector<2x16x128xf32>
    }
    %c0_13 = arith.constant 0 : index
    %c0_14 = arith.constant 0 : index
    %c0_15 = arith.constant 0 : index
    %9 = vector.load %arg14[%c0_13, %c0_14, %c0_15] : memref<2x16x128xf32, #tpu.memory_space<vmem>>, vector<2x16x128xf32>
    tpu.vector_store %arg14[%c0_13, %c0_14, %c0_15], %8 {strides = array<i32>} : memref<2x16x128xf32, #tpu.memory_space<vmem>>, vector<2x16x128xf32>,
    %10 = vector.shape_cast %8 : vector<2x16x128xf32> to vector<2x8x2x128xf32>
    %cst_16 = arith.constant dense<0xFF800000> : vector<2x8x128xf32>
    %11 = vector.multi_reduction <maximumf>, %10, %cst_16 [2] : vector<2x8x2x128xf32> to vector<2x8x128xf32>
    %12 = vector.shape_cast %11 : vector<2x8x128xf32> to vector<16x128xf32>
    %c0_17 = arith.constant 0 : index
    %c0_18 = arith.constant 0 : index
    %13 = vector.load %arg12[%c0_17, %c0_18] : memref<128x64xf32, #tpu.memory_space<vmem>>, vector<128x64xf32>
    %cst_19 = arith.constant dense<0.000000e+00> : vector<16x64xf32>
    %14 = tpu.matmul %12, %13, %cst_19 {dimension_numbers = #tpu.dot_dimension_numbers<[1], [0], [0], [1], [0, 0, 1, 1], [], []>} : vector<16x128xf32>, vector<128x64xf32>, vector<16x64xf32> -> vector<16x64xf32>
    %c0_20 = arith.constant 0 : index
    %c0_21 = arith.constant 0 : index
    %15 = vector.load %arg13[%c0_20, %c0_21] : memref<128x64xf32, #tpu.memory_space<vmem>>, vector<128x64xf32>
    %cst_22 = arith.constant dense<0.000000e+00> : vector<16x64xf32>
    %16 = tpu.matmul %12, %15, %cst_22 {dimension_numbers = #tpu.dot_dimension_numbers<[1], [0], [0], [1], [0, 0, 1, 1], [], []>} : vector<16x128xf32>, vector<128x64xf32>, vector<16x64xf32> -> vector<16x64xf32>
    %17 = arith.addf %14, %16 : vector<16x64xf32>
    %18 = arith.subf %14, %16 : vector<16x64xf32>
    %19 = math.absf %18 : vector<16x64xf32>
    %20 = arith.addf %17, %19 : vector<16x64xf32>
    %cst_23 = arith.constant 5.000000e-01 : f32
    %21 = vector.broadcast %cst_23 : f32 to vector<16x64xf32>
    %22 = arith.mulf %21, %20 : vector<16x64xf32>
    %23 = vector.shape_cast %22 : vector<16x64xf32> to vector<2x8x64xf32>
    %c0_24 = arith.constant 0 : index
    %c0_25 = arith.constant 0 : index
    %c0_26 = arith.constant 0 : index
    %24 = vector.load %arg15[%c0_24, %c0_25, %c0_26] : memref<2x8x64xf32, #tpu.memory_space<vmem>>, vector<2x8x64xf32>
    tpu.vector_store %arg15[%c0_24, %c0_25, %c0_26], %23 {strides = array<i32>} : memref<2x8x64xf32, #tpu.memory_space<vmem>>, vector<2x8x64xf32>,
    return
  }
}

</mosaic_0001>

<bundles_post_ra>
// kernel: _lambda_.1
= control target key start
LH: loop header
LB: loop body
LE: loop exit
PB: predicated region body
PF: predicated region fallthrough
CT: control target
= control target key end

     0   :  { %vm61_vm0 = vcmask 261120   ;;  %vm64_vm1 = vcmask 259072   ;;  %v4570_v0 = vmov 0.0   ;;  %s4689_s26 = smov 0   ;;  %s5713_s0 = inlined_call_operand.vmem [shape: f32[2,16,128], index: 0, kind: input, shape index: {}]   ;;  %s5714_s1 = inlined_call_operand.vmem [shape: f32[3,128,128], index: 1, kind: input, shape index: {}]   ;;  %s5715_s2 = inlined_call_operand.vmem [shape: f32[3,128,128], index: 2, kind: input, shape index: {}]   ;;  %s5716_s3 = inlined_call_operand.vmem [shape: f32[1,128], index: 3, kind: input, shape index: {}]   ;;  %s5717_s4 = inlined_call_operand.vmem [shape: f32[1,128], index: 4, kind: input, shape index: {}]   ;;  %s5718_s5 = inlined_call_operand.vmem [shape: f32[1,128], index: 5, kind: input, shape index: {}]   ;;  %s5719_s6 = inlined_call_operand.vmem [shape: f32[1,128], index: 6, kind: input, shape index: {}]   ;;  %s5720_s7 = inlined_call_operand.vmem [shape: f32[128,128], index: 7, kind: input, shape index: {}]   ;;  %s5721_s8 = inlined_call_operand.vmem [shape: f32[8,4], index: 8, kind: input, shape index: {}]   ;;  %s5722_s9 = inlined_call_operand.vmem [shape: f32[4,8], index: 9, kind: input, shape index: {}]   ;;  %s5723_s10 = inlined_call_operand.vmem [shape: f32[8,128], index: 10, kind: input, shape index: {}]   ;;  %s5724_s11 = inlined_call_operand.vmem [shape: f32[7,32,128], index: 11, kind: input, shape index: {}]   ;;  %s5725_s12 = inlined_call_operand.vmem [shape: f32[128,64], index: 12, kind: input, shape index: {}]   ;;  %s5726_s13 = inlined_call_operand.vmem [shape: f32[128,64], index: 13, kind: input, shape index: {}]   ;;  %s5727_s14 = inlined_call_operand.vmem [shape: f32[2,16,128], index: 14, kind: output, shape index: {0}]   ;;  %s5728_s15 = inlined_call_operand.vmem [shape: f32[2,8,64], index: 15, kind: output, shape index: {1}]  }
   0x1   :  { %49 = vst [vmem:[#allocation2] sm:$0xff] %v4570_v0  ;;  %50 = vst [vmem:[#allocation2 + $0x8] sm:$0xff] %v4570_v0  ;;  %v69_v1 = vld [vmem:[%s5713_s0] sm:$0xff]   ;;  %v70_v2 = vld [vmem:[%s5713_s0 + $0x8] sm:$0xff]  }
   0x2   :  { %51 = vst [vmem:[#allocation2 + $0x10] sm:$0x3] %v4570_v0  ;;  %52 = vst [vmem:[#allocation2 + $0x18] sm:$0xff] %v4570_v0  ;;  %v71_v3 = vld [vmem:[%s5713_s0 + $0x10] sm:$0xff]   ;;  %v72_v4 = vld [vmem:[%s5713_s0 + $0x18] sm:$0xff]  }
   0x3   :  { %53 = vst [vmem:[#allocation2 + $0x20] sm:$0xff] %v4570_v0  ;;  %54 = vst [vmem:[#allocation2 + $0x28] sm:$0x3] %v4570_v0 }
   0x4   :  { %55 = vst [vmem:[#allocation3] sm:$0xff] %v4570_v0  ;;  %56 = vst [vmem:[#allocation3 + $0x8] sm:$0xff] %v4570_v0 }
   0x5   :  { %57 = vst [vmem:[#allocation3 + $0x10] sm:$0x3] %v4570_v0  ;;  %58 = vst [vmem:[#allocation3 + $0x18] sm:$0xff] %v4570_v0 }
   0x6   :  { %59 = vst [vmem:[#allocation3 + $0x20] sm:$0xff] %v4570_v0  ;;  %60 = vst [vmem:[#allocation3 + $0x28] sm:$0x3] %v4570_v0 }
   0x7   :  { %62 = vst.msk [vmem:[#allocation4] sm:$0xff] %vm61_vm0, %v4570_v0  ;;  %63 = vst.msk [vmem:[#allocation4 + $0x8] sm:$0xff] %vm61_vm0, %v4570_v0 }
   0x8   :  { %66 = vst.msk [vmem:[#allocation4 + $0x18] sm:$0xff] %vm61_vm0, %v4570_v0  ;;  %67 = vst.msk [vmem:[#allocation4 + $0x20] sm:$0xff] %vm61_vm0, %v4570_v0 }
   0x9   :  { %65 = vst.msk [vmem:[#allocation4 + $0x10] sm:$0x3f] %vm64_vm1, %v4570_v0  ;;  %68 = vst.msk [vmem:[#allocation4 + $0x28] sm:$0x3f] %vm64_vm1, %v4570_v0 }
   0xa LB: > { %v3046_v5 = vld [vmem:[%s5714_s1 + $0x80] sm:$0xff]  ;;  %v3047_v6 = vld [vmem:[%s5714_s1 + $0x88] sm:$0xff]  ;;  %v3048_v7 = vld [vmem:[%s5714_s1 + $0x90] sm:$0xff]  ;;  %83 = vst [vmem:[#allocation2 + $0x1] sm:$0xff] %v4564_v1  ;;  %3486 = vmatprep.mubr.f32.mxu0 %v4564_v1  ;;  %v4571_v13 = vmov 0.0|0.0   ;;  %vm4572_vm2 = vmmov 0   ;;  %s4568_s26 = sphi %s4689_s26, %s78_s26   ;;  %v4564_v1 = vphi %v69_v1, %v5736_v1   ;;  %v4560_v2 = vphi %v70_v2, %v5735_v2   ;;  %v4556_v3 = vphi %v71_v3, %v5734_v3   ;;  %v4552_v4 = vphi %v72_v4, %v5733_v4  }
   0xb   : > { %v4005_v8 = vpack.c.bf16 %v3047_v6, %v3046_v5  ;;  %v3049_v9 = vld [vmem:[%s5714_s1 + $0x98] sm:$0xff]  ;;  %v3050_v11 = vld [vmem:[%s5714_s1 + $0xa0] sm:$0xff]  ;;  %v3051_v12 = vld [vmem:[%s5714_s1 + $0xa8] sm:$0xff]  ;;  %84 = vst [vmem:[#allocation2 + $0x9] sm:$0xff] %v4560_v2  ;;  %4101 = vmatprep.subr.bf16.mxu1 %v4571_v13  ;;  %vm667_vm7 = vcmask 1041409   ;;  %s4574_s23 = smov 80  }
   0xc   : > { %v4009_v10 = vpack.c.bf16 %v3049_v9, %v3048_v7  ;;  %85 = vst [vmem:[#allocation2 + $0x19] sm:$0xff] %v4556_v3  ;;  %86 = vst [vmem:[#allocation2 + $0x21] sm:$0xff] %v4552_v4  ;;  %v4013_v14 = vpack.c.bf16 %v3051_v12, %v3050_v11  ;;  %v3052_v15 = vld [vmem:[%s5714_s1 + $0xb0] sm:$0xff]  ;;  %v3053_v16 = vld [vmem:[%s5714_s1 + $0xb8] sm:$0xff]  ;;  %s4575_s24 = smov 112   ;;  %s4576_s25 = smov 64  }
   0xd   : > { %4006 = vmatprep.subr.bf16.mxu0 %v4005_v8  ;;  %v4017_v17 = vpack.c.bf16 %v3053_v16, %v3052_v15  ;;  %v3054_v18 = vld [vmem:[%s5714_s1 + $0xc0] sm:$0xff]  ;;  %v3055_v19 = vld [vmem:[%s5714_s1 + $0xc8] sm:$0xff]  ;;  %v3056_v21 = vld [vmem:[%s5714_s1 + $0xd0] sm:$0xff]  ;;  %s4577_s0 = smov 96   ;;  %s4578_s27 = smov 32   ;;  %vm670_vm8 = vcmask 123904  }
   0xe   : > { %4008 = vmatpush3.bf16.msra.mxu0 %v4005_v8  ;;  %v4021_v20 = vpack.c.bf16 %v3055_v19, %v3054_v18  ;;  %v3057_v22 = vld [vmem:[%s5714_s1 + $0xd8] sm:$0xff]  ;;  %v3058_v24 = vld [vmem:[%s5714_s1 + $0xe0] sm:$0xff]  ;;  %v3059_v25 = vld [vmem:[%s5714_s1 + $0xe8] sm:$0xff]  ;;  %s4579_s28 = smov 48   ;;  %s4580_s29 = smov 16   ;;  %vm745_vm9 = vcmask 255104  }
   0xf   : > { %4010 = vmatprep.subr.bf16.mxu0 %v4009_v10  ;;  %v4025_v23 = vpack.c.bf16 %v3057_v22, %v3056_v21  ;;  %v419_v26 = vld [vmem:[%s5720_s7] sm:$0xff]  ;;  %v420_v27 = vld [vmem:[%s5720_s7 + $0x8] sm:$0xff]  ;;  %v421_v28 = vld [vmem:[%s5720_s7 + $0x10] sm:$0xff]  ;;  %v4029_v31 = vpack.c.bf16 %v3059_v25, %v3058_v24  ;;  %vm749_vm10 = vcmask 386304   ;;  %vm753_vm11 = vcmask 517504   ;;  %s78_s26 = sadd.s32 1, %s4568_s26  }
  0x10   : > { %v422_v29 = vld [vmem:[%s5720_s7 + $0x18] sm:$0xff]  ;;  %v4762_v30 = vpack.c.bf16 %v420_v27, %v419_v26  ;;  %v3060_v32 = vld [vmem:[%s5714_s1 + $0xf0] sm:$0xff]  ;;  %v423_v35 = vld [vmem:[%s5720_s7 + $0x20] sm:$0xff]  ;;  %vm757_vm12 = vcmask 648704   ;;  %vm761_vm13 = vcmask 779904   ;;  %vm765_vm14 = vcmask 911104  }
  0x11   : > { %v3061_v33 = vld [vmem:[%s5714_s1 + $0xf8] sm:$0xff]  ;;  %v4771_v34 = vpack.c.bf16 %v422_v29, %v421_v28  ;;  %v424_v36 = vld [vmem:[%s5720_s7 + $0x28] sm:$0xff]  ;;  %v91_v38 = vld [vmem:[%s5714_s1] sm:$0xff]  ;;  %vm769_vm15 = vcmask 1042304   ;;  %vm724_vm1 = vcmask 7168   ;;  %p75_p0 = scmp.ge.s32.totalorder %s78_s26, 2  }
  0x12   : > { %4012 = vmatpush3.bf16.msra.mxu0 %v4009_v10  ;;  %4103 = vmatpush3.bf16.msra.mxu1 %v4762_v30  ;;  %v4033_v37 = vpack.c.bf16 %v3061_v33, %v3060_v32  ;;  %v92_v39 = vld [vmem:[%s5714_s1 + $0x8] sm:$0xff]  ;;  %v4787_v40 = vpack.c.bf16 %v424_v36, %v423_v35  ;;  %v93_v42 = vld [vmem:[%s5714_s1 + $0x10] sm:$0xff]  ;;  %v94_v43 = vld [vmem:[%s5714_s1 + $0x18] sm:$0xff] }
  0x13   : > { %4014 = vmatprep.subr.bf16.mxu0 %v4013_v14  ;;  %4104 = vmatprep.subr.bf16.mxu1 %v4571_v13  ;;  %v4037_v41 = vpack.c.bf16 %v92_v39, %v91_v38  ;;  %v4041_v44 = vpack.c.bf16 %v94_v43, %v93_v42  ;;  %v95_v45 = vld [vmem:[%s5714_s1 + $0x20] sm:$0xff]  ;;  %v96_v46 = vld [vmem:[%s5714_s1 + $0x28] sm:$0xff]  ;;  %v97_v49 = vld [vmem:[%s5714_s1 + $0x30] sm:$0xff] }
  0x14   : > { %v4045_v47 = vpack.c.bf16 %v96_v46, %v95_v45  ;;  %v87_v48 = vld [vmem:[#allocation2] sm:$0xff]  ;;  %v98_v50 = vld [vmem:[%s5714_s1 + $0x38] sm:$0xff]  ;;  %v100_v53 = vld [vmem:[%s5714_s1 + $0x48] sm:$0xff] }
  0x15   : > { %v4049_v51 = vpack.c.bf16 %v98_v50, %v97_v49  ;;  %v99_v52 = vld [vmem:[%s5714_s1 + $0x40] sm:$0xff]  ;;  %v101_v55 = vld [vmem:[%s5714_s1 + $0x50] sm:$0xff]  ;;  %v102_v56 = vld [vmem:[%s5714_s1 + $0x58] sm:$0xff]  ;;  %v4573_v50 = vmov 0.0  }
  0x16   : > { %4016 = vmatpush3.bf16.msra.mxu0 %v4013_v14  ;;  %4106 = vmatpush3.bf16.msra.mxu1 %v4771_v34  ;;  %v4053_v54 = vpack.c.bf16 %v100_v53, %v99_v52  ;;  %v4057_v57 = vpack.c.bf16 %v102_v56, %v101_v55  ;;  %v103_v58 = vld [vmem:[%s5714_s1 + $0x60] sm:$0xff]  ;;  %v104_v59 = vld [vmem:[%s5714_s1 + $0x68] sm:$0xff]  ;;  %v105_v61 = vld [vmem:[%s5714_s1 + $0x70] sm:$0xff] }
  0x17   : > { %4018 = vmatprep.subr.bf16.mxu0 %v4017_v17  ;;  %4107 = vmatprep.subr.bf16.mxu1 %v4571_v13  ;;  %v4061_v60 = vpack.c.bf16 %v104_v59, %v103_v58  ;;  %v106_v62 = vld [vmem:[%s5714_s1 + $0x78] sm:$0xff]  ;;  %v3062_v0 = vld [vmem:[%s5714_s1 + $0x100] sm:$0xff]  ;;  %v3063_v1 = vld [vmem:[%s5714_s1 + $0x108] sm:$0xff] }
  0x18   : > { %v4065_v63 = vpack.c.bf16 %v106_v62, %v105_v61  ;;  %v88_v5 = vld [vmem:[#allocation2 + $0x8] sm:$0xff]  ;;  %v89_v7 = vld [vmem:[#allocation2 + $0x18] sm:$0xff]  ;;  %v3066_v8 = vld [vmem:[%s5714_s1 + $0x120] sm:$0xff]  ;;  %3600 = vmatprep.mubr.msk.f32.mxu1 %vm4572_vm2, %v4573_v50 }
  0x19   : > { %v3067_v9 = vld [vmem:[%s5714_s1 + $0x128] sm:$0xff]  ;;  %v90_v10 = vld [vmem:[#allocation2 + $0x20] sm:$0xff]  ;;  %v3068_v14 = vld [vmem:[%s5714_s1 + $0x130] sm:$0xff] }
  0x1a   : > { %4020 = vmatpush3.bf16.msra.mxu0 %v4017_v17  ;;  %4109 = vmatpush3.bf16.msra.mxu1 %v4787_v40  ;;  %v4077_v11 = vpack.c.bf16 %v3067_v9, %v3066_v8  ;;  %v298_v12 = vld [vmem:[#allocation2 + $0x2] sm:$0xff]  ;;  %v3069_v15 = vld [vmem:[%s5714_s1 + $0x138] sm:$0xff]  ;;  %v3076_v26 = vld [vmem:[%s5714_s1 + $0x170] sm:$0xff] }
  0x1b   : > { %4022 = vmatprep.subr.bf16.mxu0 %v4021_v20  ;;  %4110 = vmatprep.subr.bf16.mxu1 %v4571_v13  ;;  %v4081_v16 = vpack.c.bf16 %v3069_v15, %v3068_v14  ;;  %v3070_v17 = vld [vmem:[%s5714_s1 + $0x140] sm:$0xff]  ;;  %v3071_v18 = vld [vmem:[%s5714_s1 + $0x148] sm:$0xff]  ;;  %v3073_v21 = vld [vmem:[%s5714_s1 + $0x158] sm:$0xff] }
  0x1c   : > { %v4085_v19 = vpack.c.bf16 %v3071_v18, %v3070_v17  ;;  %v3075_v24 = vld [vmem:[%s5714_s1 + $0x168] sm:$0xff]  ;;  %v3077_v27 = vld [vmem:[%s5714_s1 + $0x178] sm:$0xff]  ;;  %v425_v33 = vld [vmem:[%s5720_s7 + $0x30] sm:$0xff] }
  0x1d   : > { %v4097_v28 = vpack.c.bf16 %v3077_v27, %v3076_v26  ;;  %v299_v29 = vld [vmem:[#allocation2 + $0xa] sm:$0xff]  ;;  %v301_v32 = vld [vmem:[#allocation2 + $0x22] sm:$0xff]  ;;  %v426_v35 = vld [vmem:[%s5720_s7 + $0x38] sm:$0xff] }
  0x1e   : > { %4024 = vmatpush3.bf16.msra.mxu0 %v4021_v20  ;;  %v3072_v20 = vld [vmem:[%s5714_s1 + $0x150] sm:$0xff]  ;;  %v4111_v36 = vpack.c.bf16 %v426_v35, %v425_v33  ;;  %v428_v38 = vld [vmem:[%s5720_s7 + $0x48] sm:$0xff]  ;;  %v430_v42 = vld [vmem:[%s5720_s7 + $0x58] sm:$0xff] }
  0x1f   : > { %4026 = vmatprep.subr.bf16.mxu0 %v4025_v23  ;;  %v4089_v22 = vpack.c.bf16 %v3073_v21, %v3072_v20  ;;  %v432_v45 = vld [vmem:[%s5720_s7 + $0x68] sm:$0xff] }
  0x20   : > { %4112 = vmatpush3.bf16.msra.mxu1 %v4111_v36 }
  0x21   : > { %4113 = vmatprep.subr.bf16.mxu1 %v4571_v13 }
  0x22   : > { %4028 = vmatpush3.bf16.msra.mxu0 %v4025_v23  ;;  %v3074_v23 = vld [vmem:[%s5714_s1 + $0x160] sm:$0xff] }
  0x23   : > { %4030 = vmatprep.subr.bf16.mxu0 %v4029_v31  ;;  %v4093_v25 = vpack.c.bf16 %v3075_v24, %v3074_v23  ;;  %v408_v24 = vld [vmem:[%s5716_s3] sm:$0x1] }
  0x26   : > { %4032 = vmatpush3.bf16.msra.mxu0 %v4029_v31  ;;  %v300_v31 = vld [vmem:[#allocation2 + $0x1a] sm:$0xff] }
  0x27   : > { %4034 = vmatprep.subr.bf16.mxu0 %v4033_v37 }
  0x2a   : > { %4036 = vmatpush3.bf16.msra.mxu0 %v4033_v37  ;;  %v427_v37 = vld [vmem:[%s5720_s7 + $0x40] sm:$0xff] }
  0x2b   : > { %4038 = vmatprep.subr.bf16.mxu0 %v4037_v41  ;;  %v4114_v39 = vpack.c.bf16 %v428_v38, %v427_v37 }
  0x2d   : > { %3487 = vmatmul.mubr.f32.vlgmr.msra.gmra.mrb[0].mxu0 %v4560_v2  ;;  %v4069_v2 = vpack.c.bf16 %v3063_v1, %v3062_v0  ;;  %4115 = vmatpush3.bf16.msra.mxu1 %v4114_v39 }
  0x2e   : > { %4040 = vmatpush3.bf16.msra.mxu0 %v4037_v41  ;;  %3489 = vmatprep.mubr.f32.mxu0 %v4556_v3  ;;  %v3064_v3 = vld [vmem:[%s5714_s1 + $0x110] sm:$0xff] }
  0x2f   : > { %4042 = vmatprep.subr.bf16.mxu0 %v4041_v44  ;;  %4116 = vmatprep.subr.bf16.mxu1 %v4571_v13  ;;  %v429_v41 = vld [vmem:[%s5720_s7 + $0x50] sm:$0xff] }
  0x30   : > { %v4117_v43 = vpack.c.bf16 %v430_v42, %v429_v41 }
  0x31   : > { %3490 = vmatmul.mubr.f32.gmra.mrb[2].mxu0 %v4552_v4  ;;  %v3065_v4 = vld [vmem:[%s5714_s1 + $0x118] sm:$0xff] }
  0x32   : > { %4044 = vmatpush3.bf16.msra.mxu0 %v4041_v44  ;;  %3524 = vmatprep.mubr.f32.mxu0 %v87_v48  ;;  %v4073_v6 = vpack.c.bf16 %v3065_v4, %v3064_v3  ;;  %v431_v44 = vld [vmem:[%s5720_s7 + $0x60] sm:$0xff]  ;;  %v434_v48 = vld [vmem:[%s5720_s7 + $0x78] sm:$0xff] }
  0x33   : > { %4046 = vmatprep.subr.bf16.mxu0 %v4045_v47  ;;  %4118 = vmatpush3.bf16.msra.mxu1 %v4117_v43  ;;  %v4120_v46 = vpack.c.bf16 %v432_v45, %v431_v44 }
  0x34   : > { %4119 = vmatprep.subr.bf16.mxu1 %v4571_v13 }
  0x36   : > { %4048 = vmatpush3.bf16.msra.mxu0 %v4045_v47  ;;  %v433_v47 = vld [vmem:[%s5720_s7 + $0x70] sm:$0xff] }
  0x37   : > { %4050 = vmatprep.subr.bf16.mxu0 %v4049_v51  ;;  %4121 = vmatpush3.bf16.msra.mxu1 %v4120_v46  ;;  %v4123_v49 = vpack.c.bf16 %v434_v48, %v433_v47 }
  0x38   : > { %4122 = vmatprep.subr.bf16.mxu1 %v4571_v13 }
  0x3a   : > { %4052 = vmatpush3.bf16.msra.mxu0 %v4049_v51 }
  0x3b   : > { %4054 = vmatprep.subr.bf16.mxu0 %v4053_v54  ;;  %4124 = vmatpush3.bf16.msra.mxu1 %v4123_v49 }
  0x3c   : > { %4125 = vmatprep.subr.bf16.mxu1 %v4571_v13 }
  0x3e   : > { %4056 = vmatpush3.bf16.msra.mxu0 %v4053_v54 }
  0x3f   : > { %4058 = vmatprep.subr.bf16.mxu0 %v4057_v57 }
  0x42   : > { %4060 = vmatpush3.bf16.msra.mxu0 %v4057_v57 }
  0x43   : > { %4062 = vmatprep.subr.bf16.mxu0 %v4061_v60 }
  0x46   : > { %4064 = vmatpush3.bf16.msra.mxu0 %v4061_v60 }
  0x47   : > { %4066 = vmatprep.subr.bf16.mxu0 %v4065_v63 }
  0x4a   : > { %4068 = vmatpush3.bf16.msra.mxu0 %v4065_v63 }
  0x4b   : > { %4070 = vmatprep.subr.bf16.mxu0 %v4069_v2 }
  0x4d   : > { %3525 = vmatmul.mubr.f32.vlgmr.msra.gmra.mrb[0].mxu0 %v88_v5 }
  0x4e   : > { %4072 = vmatpush3.bf16.msra.mxu0 %v4069_v2  ;;  %3527 = vmatprep.mubr.f32.mxu0 %v89_v7 }
  0x4f   : > { %4074 = vmatprep.subr.bf16.mxu0 %v4073_v6 }
  0x51   : > { %3528 = vmatmul.mubr.f32.gmra.mrb[2].mxu0 %v90_v10 }
  0x52   : > { %4076 = vmatpush3.bf16.msra.mxu0 %v4073_v6  ;;  %3562 = vmatprep.mubr.f32.mxu0 %v298_v12 }
  0x53   : > { %4078 = vmatprep.subr.bf16.mxu0 %v4077_v11 }
  0x56   : > { %4080 = vmatpush3.bf16.msra.mxu0 %v4077_v11 }
  0x57   : > { %4082 = vmatprep.subr.bf16.mxu0 %v4081_v16 }
  0x5a   : > { %4084 = vmatpush3.bf16.msra.mxu0 %v4081_v16 }
  0x5b   : > { %4086 = vmatprep.subr.bf16.mxu0 %v4085_v19 }
  0x5e   : > { %4088 = vmatpush3.bf16.msra.mxu0 %v4085_v19 }
  0x5f   : > { %4090 = vmatprep.subr.bf16.mxu0 %v4089_v22 }
  0x62   : > { %4092 = vmatpush3.bf16.msra.mxu0 %v4089_v22 }
  0x63   : > { %4094 = vmatprep.subr.bf16.mxu0 %v4093_v25 }
  0x66   : > { %4096 = vmatpush3.bf16.msra.mxu0 %v4093_v25 }
  0x67   : > { %4098 = vmatprep.subr.bf16.mxu0 %v4097_v28 }
  0x6a   : > { %4100 = vmatpush3.bf16.msra.mxu0 %v4097_v28  ;;  %v3078_v28 = vld [vmem:[%s5717_s4] ss:$0 sm:$0xff] }
  0x6d   : > { %3563 = vmatmul.mubr.f32.vlgmr.msra.gmra.mrb[0].mxu0 %v299_v29 }
  0x6e   : > { %3565 = vmatprep.mubr.f32.mxu0 %v300_v31 }
  0x71   : > { %3566 = vmatmul.mubr.f32.gmra.mrb[2].mxu0 %v301_v32 }
 0x140   : > { %v3564_v51 = vpop.f32.mrb[0].mxu0 }
 0x141   : > { %v385_v52 = vpop.f32.mrb[1].mxu0 }
 0x142   : > { %v410_v53 = vadd.f32 %v3564_v51, %v385_v52 }
 0x144   : > { %v3567_v54 = vpop.f32.mrb[2].mxu0 }
 0x145   : > { %v395_v55 = vpop.f32.mrb[3].mxu0 }
 0x146   : > { %v411_v56 = vadd.f32 %v410_v53, %v395_v55 }
 0x148   : > { %v412_v57 = vadd.f32 %v3567_v54, %v411_v56 }
 0x14a   : > { %v413_v58 = vrot.slane %v412_v57, 4 }
 0x14c   : > { %v414_v59 = vadd.f32 %v413_v58, %v412_v57 }
 0x14e   : > { %v415_v60 = vrot.slane %v414_v59, 2 }
 0x150   : > { %v416_v61 = vadd.f32 %v415_v60, %v414_v59 }
 0x152   : > { %v417_v62 = vrot.slane %v416_v61, 1 }
 0x154   : > { %v418_v63 = vadd.f32 %v417_v62, %v416_v61 }
 0x156   : > { %3601 = vmatmul.mubr.f32.vlgmr.msra.gmra.mrb[0].mxu1 %v418_v63 }
 0x157   : > { %4127 = vmatpush3.bf16.msra.mxu1 %v4762_v30  ;;  %3635 = vmatprep.mubr.msk.f32.mxu1 %vm4572_vm2, %v4573_v50  ;;  %v505_v30 = vlaneseq }
 0x158   : > { %4128 = vmatprep.subr.bf16.mxu1 %v4571_v13 }
 0x15b   : > { %4130 = vmatpush3.bf16.msra.mxu1 %v4771_v34  ;;  %v4935_v34 = vshrl.u32 %v505_v30, 7 }
 0x15c   : > { %4131 = vmatprep.subr.bf16.mxu1 %v4571_v13 }
 0x15f   : > { %4133 = vmatpush3.bf16.msra.mxu1 %v4787_v40  ;;  %v4938_v40 = vsub.s32 0, %v4935_v34 }
 0x160   : > { %4134 = vmatprep.subr.bf16.mxu1 %v4571_v13 }
 0x163   : > { %4136 = vmatpush3.bf16.msra.mxu1 %v4111_v36 }
 0x164   : > { %4137 = vmatprep.subr.bf16.mxu1 %v4571_v13 }
 0x167   : > { %4139 = vmatpush3.bf16.msra.mxu1 %v4114_v39 }
 0x168   : > { %4140 = vmatprep.subr.bf16.mxu1 %v4571_v13 }
 0x16b   : > { %4142 = vmatpush3.bf16.msra.mxu1 %v4117_v43 }
 0x16c   : > { %4143 = vmatprep.subr.bf16.mxu1 %v4571_v13 }
 0x16f   : > { %4145 = vmatpush3.bf16.msra.mxu1 %v4120_v46 }
 0x170   : > { %4146 = vmatprep.subr.bf16.mxu1 %v4571_v13 }
 0x173   : > { %4148 = vmatpush3.bf16.msra.mxu1 %v4123_v49 }
 0x174   : > { %3638 = vmatprep.subr.mxu1 %v4573_v50 }
 0x229   : > { %v501_v0 = vpop.f32.mrb[0].mxu1 }
 0x22a   : > { %v508_v1 = vrot.slane %v501_v0, %v4938_v40  ;;  %v3602_v2 = vpop.f32.mrb[1].mxu1 }
 0x22c   : > { %v509_v3 = vsub.f32 %v385_v52, %v508_v1  ;;  %v510_v4 = vsub.f32 %v3564_v51, %v508_v1  ;;  %v511_v5 = vsub.f32 %v395_v55, %v508_v1  ;;  %v512_v6 = vsub.f32 %v3567_v54, %v508_v1 }
 0x22e   : > { %v513_v7 = vmul.f32 %v509_v3, %v509_v3  ;;  %v514_v8 = vmul.f32 %v510_v4, %v510_v4  ;;  %v515_v9 = vmul.f32 %v511_v5, %v511_v5  ;;  %v516_v11 = vmul.f32 %v512_v6, %v512_v6 }
 0x230   : > { %v517_v10 = vadd.f32 %v514_v8, %v513_v7 }
 0x232   : > { %v518_v12 = vadd.f32 %v517_v10, %v515_v9 }
 0x234   : > { %v519_v14 = vadd.f32 %v518_v12, %v516_v11 }
 0x236   : > { %v520_v15 = vrot.slane %v519_v14, 4 }
 0x238   : > { %v521_v16 = vadd.f32 %v520_v15, %v519_v14 }
 0x23a   : > { %v522_v17 = vrot.slane %v521_v16, 2 }
 0x23c   : > { %v523_v18 = vadd.f32 %v522_v17, %v521_v16 }
 0x23e   : > { %v524_v19 = vrot.slane %v523_v18, 1 }
 0x240   : > { %v525_v20 = vadd.f32 %v524_v19, %v523_v18 }
 0x242   : > { %3636 = vmatmul.mubr.f32.vlgmr.msra.gmra.mrb[2].mxu1 %v525_v20 }
 0x243   : > { %3640 = vmatprep.mubr.msk.f32.mxu1 %vm4572_vm2, %v4573_v50 }
 0x315   : > { %v592_v21 = vpop.f32.mrb[2].mxu1 }
 0x316   : > { %v593_v22 = vadd.f32 1e-05, %v592_v21  ;;  %v3637_v23 = vpop.f32.mrb[3].mxu1 }
 0x318   : > { %4506 = vrsqrt.f32 %v593_v22 }
 0x322   : > { %v4507_v25 = vpop.eup %4506 }
 0x323   : > { %v597_v26 = vmul.f32 %v4507_v25, %v408_v24 }
 0x325   : > { %v602_v27 = vrot.slane %v597_v26, %v4938_v40 }
 0x327   : > { %v604_v29 = vmul.f32 %v602_v27, %v509_v3  ;;  %v605_v31 = vmul.f32 %v602_v27, %v510_v4  ;;  %v606_v32 = vmul.f32 %v602_v27, %v511_v5  ;;  %v607_v33 = vmul.f32 %v602_v27, %v512_v6 }
 0x329   : > { %v614_v35 = vadd.f32 %v3078_v28, %v604_v29  ;;  %v615_v36 = vadd.f32 %v3078_v28, %v605_v31  ;;  %v616_v37 = vadd.f32 %v3078_v28, %v606_v32  ;;  %v617_v38 = vadd.f32 %v3078_v28, %v607_v33 }
 0x32b   : > { %vm618_vm3 = vcmp.ge.f32.partialorder %v614_v35, 0.0  ;;  %vm619_vm4 = vcmp.ge.f32.partialorder %v615_v36, 0.0  ;;  %vm620_vm5 = vcmp.ge.f32.partialorder %v616_v37, 0.0  ;;  %vm621_vm6 = vcmp.ge.f32.partialorder %v617_v38, 0.0 }
 0x32c   : > { %v622_v39 = vmul.f32 0.01, %v614_v35  ;;  %v623_v41 = vmul.f32 0.01, %v615_v36  ;;  %v624_v42 = vmul.f32 0.01, %v616_v37 }
 0x32d   : > { %v625_v43 = vmul.f32 0.01, %v617_v38 }
 0x32e   : > { %v4950_v44 = vsel %vm618_vm3, %v614_v35, %v622_v39  ;;  %v4952_v45 = vsel %vm619_vm4, %v615_v36, %v623_v41  ;;  %v4954_v46 = vsel %vm620_vm5, %v616_v37, %v624_v42  ;;  %vm726_vm3 = vcmask 15360  }
 0x32f   : > { %v4956_v47 = vsel %vm621_vm6, %v617_v38, %v625_v43  ;;  %v634_v48 = vadd.f32 %v4952_v45, %v4950_v44  ;;  %v651_v1 = vmax.f32 %v4950_v44, %v4952_v45  ;;  %v785_v43 = vld [vmem:[%s5721_s8] sm:$0xff]  ;;  %vm728_vm4 = vcmask 23552  }
 0x330   : > { %v641_v49 = vadd.f32 %v4956_v47, %v4954_v46  ;;  %v658_v2 = vmax.f32 %v4954_v46, %v4956_v47  ;;  %3639 = vmatpush3.msra.mxu1 %v785_v43  ;;  %vm730_vm5 = vcmask 31744   ;;  %vm732_vm6 = vcmask 39936  }
 0x331   : > { %v635_v51 = vrot.slane %v634_v48, 4  ;;  %v652_v3 = vrot.slane %v651_v1, 4  ;;  %3643 = vmatprep.subr.mxu1 %v4573_v50 }
 0x332   : > { %v642_v52 = vrot.slane %v641_v49, 4  ;;  %v659_v4 = vrot.slane %v658_v2, 4 }
 0x333   : > { %v636_v53 = vadd.f32 %v635_v51, %v634_v48  ;;  %v653_v5 = vmax.f32 %v651_v1, %v652_v3 }
 0x334   : > { %v643_v54 = vadd.f32 %v642_v52, %v641_v49  ;;  %v660_v6 = vmax.f32 %v658_v2, %v659_v4 }
 0x335   : > { %v637_v55 = vrot.slane %v636_v53, 2  ;;  %v654_v7 = vrot.slane %v653_v5, 2 }
 0x336   : > { %v644_v56 = vrot.slane %v643_v54, 2  ;;  %v661_v8 = vrot.slane %v660_v6, 2 }
 0x337   : > { %v638_v57 = vadd.f32 %v637_v55, %v636_v53  ;;  %v655_v9 = vmax.f32 %v653_v5, %v654_v7 }
 0x338   : > { %v645_v58 = vadd.f32 %v644_v56, %v643_v54  ;;  %v662_v10 = vmax.f32 %v660_v6, %v661_v8 }
 0x339   : > { %v639_v59 = vrot.slane %v638_v57, 1  ;;  %v656_v11 = vrot.slane %v655_v9, 1 }
 0x33a   : > { %v646_v60 = vrot.slane %v645_v58, 1  ;;  %v663_v12 = vrot.slane %v662_v10, 1 }
 0x33b   : > { %v640_v61 = vadd.f32 %v639_v59, %v638_v57  ;;  %v657_v14 = vmax.f32 %v655_v9, %v656_v11 }
 0x33c   : > { %v647_v62 = vadd.f32 %v646_v60, %v645_v58  ;;  %v664_v15 = vmax.f32 %v662_v10, %v663_v12 }
 0x33d   : > { %v649_v63 = vmul.f32 0.0625, %v640_v61 }
 0x33e   : > { %v650_v30 = vmul.f32 0.0625, %v647_v62  ;;  %v740_v16 = vsel %vm667_vm7, %v664_v15, %v657_v14 }
 0x33f   : > { %v742_v17 = vsel %vm670_vm8, %v740_v16, -inf  ;;  %v746_v18 = vsel %vm745_vm9, %v740_v16, -inf  ;;  %v750_v19 = vsel %vm749_vm10, %v740_v16, -inf  ;;  %v754_v20 = vsel %vm753_vm11, %v740_v16, -inf }
 0x340   : > { %v668_v0 = vsel %vm667_vm7, %v650_v30, %v649_v63  ;;  %v758_v21 = vsel %vm757_vm12, %v740_v16, -inf  ;;  %v762_v22 = vsel %vm761_vm13, %v740_v16, -inf  ;;  %v766_v24 = vsel %vm765_vm14, %v740_v16, -inf }
 0x341   : > { %689 = vrot.lane.b32.xlu1 %v668_v0, %s4574_s23  ;;  %675 = vrot.lane.b32.xlu0 %v668_v0, %s4575_s24  ;;  %v671_v23 = vsel %vm670_vm8, %v668_v0, 0.0  ;;  %v770_v25 = vsel %vm769_vm15, %v740_v16, -inf  ;;  %vm736_vm9 = vcmask 56320   ;;  %vm783_vm10 = vcmask 1041408  }
 0x342   : > { %vm786_vm11 = vcmask 64512   ;;  %vm865_vm12 = vcmask 1043456   ;;  %vm1212_vm13 = vcmask 130048   ;;  %vm1233_vm14 = vcmask 261248  }
 0x345   : > { %696 = vrot.lane.b32.xlu1 %v668_v0, %s4576_s25  ;;  %682 = vrot.lane.b32.xlu0 %v668_v0, %s4577_s0 }
 0x349   : > { %710 = vrot.lane.b32.xlu1 %v668_v0, %s4578_s27  ;;  %703 = vrot.lane.b32.xlu0 %v668_v0, %s4579_s28 }
 0x34d   : > { %717 = vrot.lane.b32.xlu0 %v668_v0, %s4580_s29 }
 0x36c   : > { %743 = vmax.xlane.f32.xlu0 %v742_v17 }
 0x36d   : > { %747 = vmax.xlane.f32.xlu1 %v746_v18 }
 0x371   : > { %751 = vmax.xlane.f32.xlu1 %v750_v19 }
 0x375   : > { %755 = vmax.xlane.f32.xlu1 %v754_v20 }
 0x379   : > { %759 = vmax.xlane.f32.xlu1 %v758_v21 }
 0x37d   : > { %763 = vmax.xlane.f32.xlu1 %v762_v22 }
 0x381   : > { %672 = vadd.xlane.f32.xlu1 %v671_v23 }
 0x385   : > { %767 = vmax.xlane.f32.xlu1 %v766_v24  ;;  %v861_v24 = vld [vmem:[%s5722_s9] sm:$0xf] }
 0x389   : > { %771 = vmax.xlane.f32.xlu1 %v770_v25 }
 0x3b3   : > { %v676_v26 = vpop.permute.xlu0 %675  ;;  %v690_v28 = vpop.permute.xlu1 %689 }
 0x3b4   : > { %v678_v27 = vsel %vm670_vm8, %v676_v26, 0.0  ;;  %v692_v32 = vsel %vm670_vm8, %v690_v28, 0.0 }
 0x3b5   : > { %679 = vadd.xlane.f32.xlu0 %v678_v27 }
 0x3b7   : > { %v683_v29 = vpop.permute.xlu0 %682  ;;  %v697_v33 = vpop.permute.xlu1 %696 }
 0x3b8   : > { %v685_v31 = vsel %vm670_vm8, %v683_v29, 0.0  ;;  %v699_v35 = vsel %vm670_vm8, %v697_v33, 0.0  ;;  %v949_v29 = vld [vmem:[%s5723_s10] sm:$0xff] }
 0x3b9   : > { %686 = vadd.xlane.f32.xlu0 %v685_v31 }
 0x3bb   : > { %v704_v36 = vpop.permute.xlu0 %703  ;;  %v711_v38 = vpop.permute.xlu1 %710 }
 0x3bc   : > { %v706_v37 = vsel %vm670_vm8, %v704_v36, 0.0  ;;  %v713_v39 = vsel %vm670_vm8, %v711_v38, 0.0 }
 0x3bd   : > { %693 = vadd.xlane.f32.xlu0 %v692_v32 }
 0x3bf   : > { %v718_v41 = vpop.permute.xlu0 %717 }
 0x3c0   : > { %v720_v42 = vsel %vm670_vm8, %v718_v41, 0.0  ;;  %vm734_vm8 = vcmask 48128  }
 0x3c1   : > { %700 = vadd.xlane.f32.xlu0 %v699_v35 }
 0x3c5   : > { %707 = vadd.xlane.f32.xlu0 %v706_v37 }
 0x3c9   : > { %714 = vadd.xlane.f32.xlu0 %v713_v39 }
 0x3cd   : > { %721 = vadd.xlane.f32.xlu0 %v720_v42  ;;  %v4581_v42 = vmov 1966171168  }
 0x3ce   : > { %v1029_v43 = vunpack.c.l.s4 %v4581_v42 }
 0x3f9   : > { %v744_v52 = vpop.xlane.xlu0 %743 }
 0x3fa   : > { %v748_v48 = vpop.xlane.xlu1 %747 }
 0x3fb   : > { %v773_v62 = vsel %vm724_vm1, %v744_v52, %v748_v48  ;;  %v1030_v48 = vunpack.c.0.s8 %v1029_v43 }
 0x3fe   : > { %v752_v49 = vpop.xlane.xlu1 %751 }
 0x3ff   : > { %v774_v30 = vsel %vm726_vm3, %v773_v62, %v752_v49  ;;  %v1033_v49 = vsub.s32 %v1030_v48, %v4935_v34 }
 0x402   : > { %v756_v51 = vpop.xlane.xlu1 %755 }
 0x403   : > { %v775_v1 = vsel %vm728_vm4, %v774_v30, %v756_v51 }
 0x406   : > { %v760_v53 = vpop.xlane.xlu1 %759 }
 0x407   : > { %v776_v4 = vsel %vm730_vm5, %v775_v1, %v760_v53 }
 0x40a   : > { %v764_v55 = vpop.xlane.xlu1 %763 }
 0x40b   : > { %v777_v8 = vsel %vm732_vm6, %v776_v4, %v764_v55 }
 0x40e   : > { %v673_v57 = vpop.xlane.xlu1 %672 }
 0x40f   : > { %v674_v2 = vmul.f32 0.0625, %v673_v57 }
 0x412   : > { %v768_v60 = vpop.xlane.xlu1 %767 }
 0x413   : > { %v778_v11 = vsel %vm734_vm8, %v777_v8, %v768_v60 }
 0x416   : > { %v772_v5 = vpop.xlane.xlu1 %771 }
 0x417   : > { %v779_v15 = vsel %vm736_vm9, %v778_v11, %v772_v5 }
 0x418   : > { %v781_v21 = vrot.slane %v779_v15, 6 }
 0x442   : > { %v680_v54 = vpop.xlane.xlu0 %679 }
 0x443   : > { %v681_v63 = vmul.f32 0.0625, %v680_v54 }
 0x445   : > { %v725_v9 = vsel %vm724_vm1, %v674_v2, %v681_v63 }
 0x446   : > { %v687_v56 = vpop.xlane.xlu0 %686 }
 0x447   : > { %v688_v0 = vmul.f32 0.0625, %v687_v56 }
 0x449   : > { %v727_v12 = vsel %vm726_vm3, %v725_v9, %v688_v0 }
 0x44a   : > { %v694_v58 = vpop.xlane.xlu0 %693 }
 0x44b   : > { %v695_v3 = vmul.f32 0.0625, %v694_v58 }
 0x44d   : > { %v729_v16 = vsel %vm728_vm4, %v727_v12, %v695_v3  ;;  %vm2823_vm4 = vcmask (%p75_p0), 1043459  }
 0x44e   : > { %v701_v59 = vpop.xlane.xlu0 %700 }
 0x44f   : > { %v702_v6 = vmul.f32 0.0625, %v701_v59 }
 0x451   : > { %v731_v17 = vsel %vm730_vm5, %v729_v16, %v702_v6 }
 0x452   : > { %v708_v61 = vpop.xlane.xlu0 %707 }
 0x453   : > { %v709_v10 = vmul.f32 0.0625, %v708_v61 }
 0x455   : > { %v733_v19 = vsel %vm732_vm6, %v731_v17, %v709_v10  ;;  %vm2827_vm6 = vcmask (%p75_p0), 1045509  }
 0x456   : > { %v715_v7 = vpop.xlane.xlu0 %714 }
 0x457   : > { %v716_v14 = vmul.f32 0.0625, %v715_v7 }
 0x459   : > { %v735_v22 = vsel %vm734_vm8, %v733_v19, %v716_v14  ;;  %vm2829_vm8 = vcmask (%p75_p0), 1046534  }
 0x45a   : > { %v722_v18 = vpop.xlane.xlu0 %721 }
 0x45b   : > { %v723_v20 = vmul.f32 0.0625, %v722_v18 }
 0x45d   : > { %v737_v23 = vsel %vm736_vm9, %v735_v22, %v723_v20  ;;  %vm2831_vm9 = vcmask (%p75_p0), 1047559  }
 0x45e   : > { %v784_v25 = vsel %vm783_vm10, %v737_v23, %v781_v21 }
 0x45f   : > { %3641 = vmatmul.mubr.msk.f32.vlgmr.msra.gmra.mrb[4].mxu1 %vm786_vm11, %v784_v25  ;;  %v3083_v25 = vld [vmem:[%s5724_s11 + $0x20] sm:$0xff] }
 0x460   : > { %3644 = vmatpush3.msk.msra.mxu1 %vm865_vm12, %v861_v24  ;;  %3645 = vmatprep.mubr.msk.f32.mxu1 %vm4572_vm2, %v4573_v50 }
 0x461   : > { %3648 = vmatprep.subr.mxu1 %v4573_v50 }
 0x532   : > { %v856_v26 = vpop.f32.mrb[4].mxu1 }
 0x533   : > { %v860_v27 = vmax.f32 %v856_v26, 0.0  ;;  %v3642_v28 = vpop.f32.mrb[5].mxu1  ;;  %v3084_v26 = vld [vmem:[%s5724_s11 + $0x28] sm:$0xff] }
 0x534   : > { %v4149_v28 = vpack.c.bf16 %v3084_v26, %v3083_v25 }
 0x535   : > { %3646 = vmatmul.mubr.msk.f32.vlgmr.msra.gmra.mrb[6].mxu1 %vm730_vm5, %v860_v27  ;;  %vm2825_vm5 = vcmask (%p75_p0), 1044484  }
 0x536   : > { %3650 = vmatprep.mubr.msk.f32.mxu1 %vm4572_vm2, %v4573_v50  ;;  %3649 = vmatpush3.msra.mxu1 %v949_v29  ;;  %v3085_v29 = vld [vmem:[%s5724_s11 + $0x30] sm:$0xff] }
 0x537   : > { %4150 = vmatprep.subr.bf16.mxu1 %v4149_v28 }
 0x608   : > { %v935_v31 = vpop.f32.mrb[6].mxu1 }
 0x609   : > { %v940_v32 = vrot.slane %v935_v31, 2  ;;  %v3647_v33 = vpop.f32.mrb[7].mxu1 }
 0x60b   : > { %v942_v35 = vadd.f32 %v940_v32, %v935_v31  ;;  %v3086_v31 = vld [vmem:[%s5724_s11 + $0x38] sm:$0xff] }
 0x60d   : > { %v943_v36 = vsub.f32 0.0, %v942_v35 }
 0x60f   : > { %v944_v37 = vmul.f32 1.442695, %v943_v36  ;;  %v4153_v36 = vpack.c.bf16 %v3086_v31, %v3085_v29 }
 0x611   : > { %4508 = vpow2.f32 %v944_v37 }
 0x61b   : > { %v4509_v38 = vpop.eup %4508 }
 0x61c   : > { %v946_v39 = vadd.f32 1.0, %v4509_v38 }
 0x61e   : > { %4510 = vrcp.f32 %v946_v39 }
 0x628   : > { %v4511_v41 = vpop.eup %4510 }
 0x629   : > { %3651 = vmatmul.mubr.msk.f32.vlgmr.msra.gmra.mrb[8].mxu1 %vm786_vm11, %v4511_v41 }
 0x62a   : > { %4152 = vmatpush3.bf16.msra.mxu1 %v4149_v28 }
 0x62b   : > { %4154 = vmatprep.subr.bf16.mxu1 %v4153_v36 }
 0x62e   : > { %4156 = vmatpush3.bf16.msra.mxu1 %v4153_v36 }
 0x6fc   : > { %v1019_v51 = vpop.f32.mrb[8].mxu1 }
 0x6fd   : > { %v1034_v52 = vrot.slane %v1019_v51, %v1033_v49  ;;  %v3652_v53 = vpop.f32.mrb[9].mxu1 }
 0x6ff   : > { %v1035_v54 = vcombine.high %v1034_v52, %v1034_v52  ;;  %v1042_v55 = vrot.slane %v1034_v52, %v1033_v49 }
 0x701   : > { %v1053_v56 = vrot.slane %v1042_v55, %v4938_v40  ;;  %v1049_v57 = vrot.slane %v1035_v54, %v1033_v49 }
 0x703   : > { %v5020_v58 = vmul.f32 %v1053_v56, %v4950_v44  ;;  %v5023_v59 = vmul.f32 %v1053_v56, %v4952_v45  ;;  %v1057_v60 = vrot.slane %v1049_v57, %v4938_v40 }
 0x705   : > { %1070 = vrot.lane.b32.xlu1 %v5023_v59, %s4575_s24  ;;  %1068 = vrot.lane.b32.xlu0 %v5020_v58, %s4575_s24  ;;  %v5035_v61 = vmul.f32 %v1057_v60, %v4954_v46  ;;  %v5042_v62 = vmul.f32 %v1057_v60, %v4956_v47 }
 0x709   : > { %1088 = vrot.lane.b32.xlu1 %v5020_v58, %s4577_s0  ;;  %1090 = vrot.lane.b32.xlu0 %v5023_v59, %s4577_s0 }
 0x70d   : > { %1108 = vrot.lane.b32.xlu0 %v5020_v58, %s4574_s23  ;;  %1072 = vrot.lane.b32.xlu1 %v5035_v61, %s4575_s24 }
 0x711   : > { %1110 = vrot.lane.b32.xlu0 %v5023_v59, %s4574_s23  ;;  %1074 = vrot.lane.b32.xlu1 %v5042_v62, %s4575_s24 }
 0x715   : > { %1128 = vrot.lane.b32.xlu0 %v5020_v58, %s4576_s25  ;;  %1092 = vrot.lane.b32.xlu1 %v5035_v61, %s4577_s0 }
 0x719   : > { %1130 = vrot.lane.b32.xlu0 %v5023_v59, %s4576_s25  ;;  %1094 = vrot.lane.b32.xlu1 %v5042_v62, %s4577_s0 }
 0x71d   : > { %1148 = vrot.lane.b32.xlu0 %v5020_v58, %s4579_s28  ;;  %1112 = vrot.lane.b32.xlu1 %v5035_v61, %s4574_s23 }
 0x721   : > { %1150 = vrot.lane.b32.xlu0 %v5023_v59, %s4579_s28  ;;  %1114 = vrot.lane.b32.xlu1 %v5042_v62, %s4574_s23 }
 0x725   : > { %1168 = vrot.lane.b32.xlu0 %v5020_v58, %s4578_s27  ;;  %1132 = vrot.lane.b32.xlu1 %v5035_v61, %s4576_s25 }
 0x729   : > { %1170 = vrot.lane.b32.xlu0 %v5023_v59, %s4578_s27  ;;  %1134 = vrot.lane.b32.xlu1 %v5042_v62, %s4576_s25 }
 0x72d   : > { %1188 = vrot.lane.b32.xlu0 %v5020_v58, %s4580_s29  ;;  %1152 = vrot.lane.b32.xlu1 %v5035_v61, %s4579_s28 }
 0x731   : > { %1190 = vrot.lane.b32.xlu0 %v5023_v59, %s4580_s29  ;;  %1154 = vrot.lane.b32.xlu1 %v5042_v62, %s4579_s28 }
 0x735   : > { %1174 = vrot.lane.b32.xlu0 %v5042_v62, %s4578_s27  ;;  %1172 = vrot.lane.b32.xlu1 %v5035_v61, %s4578_s27 }
 0x739   : > { %1194 = vrot.lane.b32.xlu0 %v5042_v62, %s4580_s29  ;;  %1192 = vrot.lane.b32.xlu1 %v5035_v61, %s4580_s29 }
 0x777   : > { %v1071_v63 = vpop.permute.xlu1 %1070  ;;  %v1069_v30 = vpop.permute.xlu0 %1068 }
 0x778   : > { %v1080_v15 = vmax.f32 %v5020_v58, %v1069_v30  ;;  %v1084_v16 = vadd.f32 %v1069_v30, %v5020_v58  ;;  %v1081_v19 = vmax.f32 %v5023_v59, %v1071_v63  ;;  %v1085_v22 = vadd.f32 %v1071_v63, %v5023_v59 }
 0x77b   : > { %v1089_v0 = vpop.permute.xlu1 %1088  ;;  %v1091_v1 = vpop.permute.xlu0 %1090 }
 0x77c   : > { %v1100_v17 = vmax.f32 %v1080_v15, %v1089_v0  ;;  %v1104_v18 = vadd.f32 %v1089_v0, %v1084_v16  ;;  %v1101_v27 = vmax.f32 %v1081_v19, %v1091_v1  ;;  %v1105_v32 = vadd.f32 %v1091_v1, %v1085_v22 }
 0x77f   : > { %v1109_v2 = vpop.permute.xlu0 %1108  ;;  %v1073_v3 = vpop.permute.xlu1 %1072 }
 0x780   : > { %v1120_v23 = vmax.f32 %v1100_v17, %v1109_v2  ;;  %v1124_v24 = vadd.f32 %v1109_v2, %v1104_v18  ;;  %v1082_v53 = vmax.f32 %v5035_v61, %v1073_v3  ;;  %v1086_v54 = vadd.f32 %v1073_v3, %v5035_v61  ;;  %v1243_v3 = vld [vmem:[%s5724_s11 + $0x8] sm:$0xff] }
 0x783   : > { %v1111_v4 = vpop.permute.xlu0 %1110  ;;  %v1075_v5 = vpop.permute.xlu1 %1074 }
 0x784   : > { %v1121_v39 = vmax.f32 %v1101_v27, %v1111_v4  ;;  %v1125_v41 = vadd.f32 %v1111_v4, %v1105_v32  ;;  %v1083_v55 = vmax.f32 %v5042_v62, %v1075_v5  ;;  %v1087_v56 = vadd.f32 %v1075_v5, %v5042_v62 }
 0x787   : > { %v1129_v6 = vpop.permute.xlu0 %1128  ;;  %v1093_v7 = vpop.permute.xlu1 %1092 }
 0x788   : > { %v1140_v33 = vmax.f32 %v1120_v23, %v1129_v6  ;;  %v1144_v35 = vadd.f32 %v1129_v6, %v1124_v24  ;;  %v1102_v2 = vmax.f32 %v1082_v53, %v1093_v7  ;;  %v1106_v4 = vadd.f32 %v1093_v7, %v1086_v54 }
 0x78b   : > { %v1131_v8 = vpop.permute.xlu0 %1130  ;;  %v1095_v9 = vpop.permute.xlu1 %1094 }
 0x78c   : > { %v1141_v48 = vmax.f32 %v1121_v39, %v1131_v8  ;;  %v1145_v49 = vadd.f32 %v1131_v8, %v1125_v41  ;;  %v1103_v6 = vmax.f32 %v1083_v55, %v1095_v9  ;;  %v1107_v8 = vadd.f32 %v1095_v9, %v1087_v56  ;;  %v1244_v55 = vld [vmem:[%s5724_s11 + $0x10] sm:$0xff]  ;;  %v1245_v56 = vld [vmem:[%s5724_s11 + $0x18] sm:$0xff] }
 0x78f   : > { %v1149_v10 = vpop.permute.xlu0 %1148  ;;  %v5088_v11 = vpop.permute.xlu1 %1112 }
 0x790   : > { %v1160_v42 = vmax.f32 %v1140_v33, %v1149_v10  ;;  %v1164_v43 = vadd.f32 %v1149_v10, %v1144_v35  ;;  %v1242_v10 = vld [vmem:[%s5724_s11] sm:$0xff]  ;;  %v1122_v17 = vmax.f32 %v1102_v2, %v5088_v11  ;;  %v1126_v7 = vadd.f32 %v5088_v11, %v1106_v4 }
 0x793   : > { %v1151_v12 = vpop.permute.xlu0 %1150  ;;  %v5090_v14 = vpop.permute.xlu1 %1114 }
 0x794   : > { %v1161_v63 = vmax.f32 %v1141_v48, %v1151_v12  ;;  %v1165_v30 = vadd.f32 %v1151_v12, %v1145_v49  ;;  %v4157_v12 = vpack.c.bf16 %v1243_v3, %v1242_v10  ;;  %v1123_v19 = vmax.f32 %v1103_v6, %v5090_v14  ;;  %v3098_v10 = vld [vmem:[%s5724_s11 + $0x58] sm:$0xff] }
 0x796   : > { %4158 = vmatprep.subr.bf16.mxu1 %v4157_v12 }
 0x797   : > { %v1169_v20 = vpop.permute.xlu0 %1168  ;;  %v1133_v21 = vpop.permute.xlu1 %1132 }
 0x798   : > { %v1180_v51 = vmax.f32 %v1160_v42, %v1169_v20  ;;  %v1184_v52 = vadd.f32 %v1169_v20, %v1164_v43  ;;  %v1127_v20 = vadd.f32 %v5090_v14, %v1107_v8  ;;  %v1142_v24 = vmax.f32 %v1122_v17, %v1133_v21  ;;  %v3097_v8 = vld [vmem:[%s5724_s11 + $0x50] sm:$0xff] }
 0x799   : > { %v1146_v25 = vadd.f32 %v1133_v21, %v1126_v7 }
 0x79b   : > { %v1171_v37 = vpop.permute.xlu0 %1170  ;;  %v1135_v38 = vpop.permute.xlu1 %1134 }
 0x79c   : > { %v1181_v5 = vmax.f32 %v1161_v63, %v1171_v37  ;;  %v1185_v15 = vadd.f32 %v1171_v37, %v1165_v30  ;;  %v1143_v26 = vmax.f32 %v1123_v19, %v1135_v38  ;;  %v1147_v27 = vadd.f32 %v1135_v38, %v1127_v20  ;;  %v3106_v19 = vld [vmem:[%s5724_s11 + $0x78] sm:$0xff] }
 0x79f   : > { %v1189_v57 = vpop.permute.xlu0 %1188  ;;  %v1153_v60 = vpop.permute.xlu1 %1152 }
 0x7a0   : > { %v1200_v0 = vmax.f32 %v1180_v51, %v1189_v57  ;;  %v1204_v1 = vadd.f32 %v1189_v57, %v1184_v52  ;;  %v1162_v31 = vmax.f32 %v1142_v24, %v1153_v60  ;;  %v1166_v32 = vadd.f32 %v1153_v60, %v1146_v25  ;;  %v3111_v24 = vld [vmem:[%s5724_s11 + $0x80] sm:$0xff]  ;;  %v3112_v25 = vld [vmem:[%s5724_s11 + $0x88] sm:$0xff] }
 0x7a1   : > { %v4161_v57 = vpack.c.bf16 %v1245_v56, %v1244_v55  ;;  %v3130_v55 = vld [vmem:[%s5724_s11 + $0xd8] sm:$0xff] }
 0x7a2   : > { %v1208_v16 = vmul.f32 0.125, %v1204_v1  ;;  %1221 = vrot.lane.b32.xlu1 %v1200_v0, %s4580_s29  ;;  %v3095_v0 = vld [vmem:[%s5724_s11 + $0x40] sm:$0xff]  ;;  %v3096_v1 = vld [vmem:[%s5724_s11 + $0x48] sm:$0xff] }
 0x7a3   : > { %v1191_v18 = vpop.permute.xlu0 %1190  ;;  %v1155_v9 = vpop.permute.xlu1 %1154  ;;  %v4165_v2 = vpack.c.bf16 %v3096_v1, %v3095_v0 }
 0x7a4   : > { %v1201_v22 = vmax.f32 %v1181_v5, %v1191_v18  ;;  %v1205_v23 = vadd.f32 %v1191_v18, %v1185_v15  ;;  %1213 = vst.msk [vmem:[#allocation4 + $0x3] sm:$0xff] %vm1212_vm13, %v1208_v16  ;;  %v1163_v33 = vmax.f32 %v1143_v26, %v1155_v9  ;;  %v1167_v35 = vadd.f32 %v1155_v9, %v1147_v27  ;;  %v3103_v16 = vld [vmem:[%s5724_s11 + $0x60] sm:$0xff]  ;;  %v3105_v9 = vld [vmem:[%s5724_s11 + $0x70] sm:$0xff] }
 0x7a5   : > { %v4169_v5 = vpack.c.bf16 %v3098_v10, %v3097_v8  ;;  %v4181_v27 = vpack.c.bf16 %v3112_v25, %v3111_v24  ;;  %v3136_v8 = vld [vmem:[%s5715_s2 + $0x88] sm:$0xff]  ;;  %v3146_v24 = vld [vmem:[%s5715_s2 + $0xd8] sm:$0xff] }
 0x7a6   : > { %v1209_v28 = vmul.f32 0.125, %v1205_v23  ;;  %1223 = vrot.lane.b32.xlu0 %v1201_v22, %s4580_s29  ;;  %v4177_v22 = vpack.c.bf16 %v3106_v19, %v3105_v9  ;;  %v3143_v19 = vld [vmem:[%s5715_s2 + $0xc0] sm:$0xff] }
 0x7a7   : > { %v1175_v29 = vpop.permute.xlu0 %1174  ;;  %v1173_v11 = vpop.permute.xlu1 %1172 }
 0x7a8   : > { %1214 = vst.msk [vmem:[#allocation4 + $0xb] sm:$0xff] %vm1212_vm13, %v1209_v28  ;;  %v1183_v14 = vmax.f32 %v1163_v33, %v1175_v29  ;;  %v1187_v36 = vadd.f32 %v1175_v29, %v1167_v35  ;;  %v1182_v37 = vmax.f32 %v1162_v31, %v1173_v11  ;;  %v1186_v39 = vadd.f32 %v1173_v11, %v1166_v32  ;;  %v3113_v29 = vld [vmem:[%s5724_s11 + $0x90] sm:$0xff]  ;;  %v3114_v11 = vld [vmem:[%s5724_s11 + $0x98] sm:$0xff]  ;;  %v3119_v35 = vld [vmem:[%s5724_s11 + $0xa0] sm:$0xff] }
 0x7a9   : > { %v4185_v32 = vpack.c.bf16 %v3114_v11, %v3113_v29  ;;  %v3149_v29 = vld [vmem:[%s5715_s2 + $0xf0] sm:$0xff]  ;;  %v3150_v11 = vld [vmem:[%s5715_s2 + $0xf8] sm:$0xff] }
 0x7ab   : > { %v1195_v41 = vpop.permute.xlu0 %1194  ;;  %v1193_v42 = vpop.permute.xlu1 %1192 }
 0x7ac   : > { %v1203_v21 = vmax.f32 %v1183_v14, %v1195_v41  ;;  %v1207_v43 = vadd.f32 %v1195_v41, %v1187_v36  ;;  %v1202_v38 = vmax.f32 %v1182_v37, %v1193_v42  ;;  %v1206_v48 = vadd.f32 %v1193_v42, %v1186_v39  ;;  %v3120_v14 = vld [vmem:[%s5724_s11 + $0xa8] sm:$0xff]  ;;  %v3121_v41 = vld [vmem:[%s5724_s11 + $0xb0] sm:$0xff]  ;;  %v3122_v42 = vld [vmem:[%s5724_s11 + $0xb8] sm:$0xff] }
 0x7ad   : > { %v4189_v37 = vpack.c.bf16 %v3120_v14, %v3119_v35  ;;  %v2363_v14 = vld [vmem:[%s5720_s7] sm:$0xff] }
 0x7ae   : > { %v1211_v49 = vmul.f32 0.125, %v1207_v43  ;;  %v1210_v51 = vmul.f32 0.125, %v1206_v48  ;;  %1227 = vrot.lane.b32.xlu0 %v1203_v21, %s4580_s29  ;;  %1225 = vrot.lane.b32.xlu1 %v1202_v38, %s4580_s29  ;;  %v4193_v43 = vpack.c.bf16 %v3122_v42, %v3121_v41  ;;  %v3127_v48 = vld [vmem:[%s5724_s11 + $0xc0] sm:$0xff]  ;;  %v2366_v41 = vld [vmem:[%s5720_s7 + $0x18] sm:$0xff] }
 0x7b0   : > { %1215 = vst.msk [vmem:[#allocation4 + $0x1b] sm:$0xff] %vm1212_vm13, %v1210_v51  ;;  %1216 = vst.msk [vmem:[#allocation4 + $0x23] sm:$0xff] %vm1212_vm13, %v1211_v49  ;;  %v3128_v49 = vld [vmem:[%s5724_s11 + $0xc8] sm:$0xff] }
 0x814   : > { %v1222_v52 = vpop.permute.xlu1 %1221 }
 0x815   : > { %1234 = vst.msk [vmem:[#allocation4 + $0x3] sm:$0xff] %vm1233_vm14, %v1222_v52  ;;  %v4197_v52 = vpack.c.bf16 %v3128_v49, %v3127_v48 }
 0x818   : > { %v1224_v53 = vpop.permute.xlu0 %1223 }
 0x819   : > { %1235 = vst.msk [vmem:[#allocation4 + $0xb] sm:$0xff] %vm1233_vm14, %v1224_v53 }
 0x81c   : > { %v1246_v54 = vld [vmem:[#allocation4 + $0x1] sm:$0xff] }
 0x81d   : > { %3661 = vmatprep.mubr.msk.f32.mxu1 %vm61_vm0, %v1246_v54  ;;  %v1238_v3 = vld [vmem:[#allocation4] sm:$0xff]  ;;  %v3129_v54 = vld [vmem:[%s5724_s11 + $0xd0] sm:$0xff] }
 0x81e   : > { %v1449_v20 = vld [vmem:[#allocation4 + $0x2] sm:$0xff] }
 0x81f   : > { %v1559_v31 = vld [vmem:[#allocation4 + $0x3] sm:$0xff] }
 0x820   : > { %v1228_v60 = vpop.permute.xlu0 %1227  ;;  %v1226_v63 = vpop.permute.xlu1 %1225  ;;  %v1247_v30 = vld [vmem:[#allocation4 + $0x9] sm:$0xff] }
 0x821   : > { %1237 = vst.msk [vmem:[#allocation4 + $0x23] sm:$0xff] %vm1233_vm14, %v1228_v60  ;;  %1236 = vst.msk [vmem:[#allocation4 + $0x1b] sm:$0xff] %vm1233_vm14, %v1226_v63  ;;  %3662 = vmatmul.mubr.msk.f32.vlgmr.msra.gmra.mrb[10].mxu1 %vm61_vm0, %v1247_v30  ;;  %v1239_v15 = vld [vmem:[#allocation4 + $0x8] sm:$0xff] }
 0x822   : > { %4160 = vmatpush3.bf16.msra.mxu1 %v4157_v12  ;;  %v3104_v12 = vld [vmem:[%s5724_s11 + $0x68] sm:$0xff] }
 0x823   : > { %4162 = vmatprep.subr.bf16.mxu1 %v4161_v57  ;;  %v4173_v7 = vpack.c.bf16 %v3104_v12, %v3103_v16  ;;  %v1450_v23 = vld [vmem:[#allocation4 + $0xa] sm:$0xff]  ;;  %v3139_v16 = vld [vmem:[%s5715_s2 + $0xa0] sm:$0xff] }
 0x824   : > { %v1560_v33 = vld [vmem:[#allocation4 + $0xb] sm:$0xff] }
 0x825   : > { %v1669_v21 = vld [vmem:[#allocation4 + $0x4] sm:$0xff]  ;;  %v1670_v38 = vld [vmem:[#allocation4 + $0xc] sm:$0xff] }
 0x826   : > { %4164 = vmatpush3.bf16.msra.mxu1 %v4161_v57  ;;  %v1779_v56 = vld [vmem:[#allocation4 + $0x5] sm:$0xff]  ;;  %v4201_v57 = vpack.c.bf16 %v3130_v55, %v3129_v54  ;;  %v1780_v60 = vld [vmem:[#allocation4 + $0xd] sm:$0xff] }
 0x827   : > { %4166 = vmatprep.subr.bf16.mxu1 %v4165_v2  ;;  %v1889_v0 = vld [vmem:[#allocation4 + $0x6] sm:$0xff]  ;;  %v1890_v1 = vld [vmem:[#allocation4 + $0xe] sm:$0xff] }
 0x828   : > { %v1248_v4 = vld [vmem:[#allocation4 + $0x19] sm:$0xff]  ;;  %v1249_v6 = vld [vmem:[#allocation4 + $0x21] sm:$0xff] }
 0x829   : > { %3664 = vmatprep.mubr.msk.f32.mxu1 %vm61_vm0, %v1248_v4  ;;  %v1240_v17 = vld [vmem:[#allocation4 + $0x18] sm:$0xff]  ;;  %v1241_v18 = vld [vmem:[#allocation4 + $0x20] sm:$0xff]  ;;  %v3140_v12 = vld [vmem:[%s5715_s2 + $0xa8] sm:$0xff] }
 0x82a   : > { %3665 = vmatmul.mubr.msk.f32.gmra.mrb[12].mxu1 %vm61_vm0, %v1249_v6  ;;  %v1451_v26 = vld [vmem:[#allocation4 + $0x1a] sm:$0xff]  ;;  %v1452_v28 = vld [vmem:[#allocation4 + $0x22] sm:$0xff] }
 0x82b   : > { %3675 = vmatprep.mubr.msk.f32.mxu1 %vm61_vm0, %v1238_v3  ;;  %v1561_v36 = vld [vmem:[#allocation4 + $0x1b] sm:$0xff]  ;;  %v1562_v39 = vld [vmem:[#allocation4 + $0x23] sm:$0xff]  ;;  %v3137_v3 = vld [vmem:[%s5715_s2 + $0x90] sm:$0xff] }
 0x82c   : > { %v1671_v51 = vld [vmem:[#allocation4 + $0x1c] sm:$0xff]  ;;  %v1672_v53 = vld [vmem:[#allocation4 + $0x24] sm:$0xff] }
 0x82d   : > { %v1781_v63 = vld [vmem:[#allocation4 + $0x1d] sm:$0xff]  ;;  %v1782_v30 = vld [vmem:[#allocation4 + $0x25] sm:$0xff] }
 0x82e   : > { %3676 = vmatmul.mubr.msk.f32.vlgmr.msra.gmra.mrb[10].mxu1 %vm61_vm0, %v1239_v15  ;;  %v1892_v4 = vld [vmem:[#allocation4 + $0x26] sm:$0xff] }
 0x82f   : > { %4168 = vmatpush3.bf16.msra.mxu1 %v4165_v2  ;;  %3678 = vmatprep.mubr.msk.f32.mxu1 %vm61_vm0, %v1240_v17  ;;  %v1891_v2 = vld [vmem:[#allocation4 + $0x1e] sm:$0xff]  ;;  %v4213_v17 = vpack.c.bf16 %v3140_v12, %v3139_v16 }
 0x830   : > { %4170 = vmatprep.subr.bf16.mxu1 %v4169_v5  ;;  %v3135_v6 = vld [vmem:[%s5715_s2 + $0x80] sm:$0xff]  ;;  %v2038_v16 = vld [vmem:[%s5715_s2 + $0x18] sm:$0xff] }
 0x831   : > { %v4205_v10 = vpack.c.bf16 %v3136_v8, %v3135_v6 }
 0x832   : > { %3679 = vmatmul.mubr.msk.f32.gmra.mrb[12].mxu1 %vm61_vm0, %v1241_v18  ;;  %v3142_v18 = vld [vmem:[%s5715_s2 + $0xb8] sm:$0xff] }
 0x833   : > { %4172 = vmatpush3.bf16.msra.mxu1 %v4169_v5  ;;  %3689 = vmatprep.mubr.msk.f32.mxu1 %vm61_vm0, %v1449_v20  ;;  %v3138_v5 = vld [vmem:[%s5715_s2 + $0x98] sm:$0xff]  ;;  %v3144_v20 = vld [vmem:[%s5715_s2 + $0xc8] sm:$0xff] }
 0x834   : > { %4174 = vmatprep.subr.bf16.mxu1 %v4173_v7  ;;  %4206 = vmatprep.subr.bf16.mxu0 %v4205_v10  ;;  %v4209_v15 = vpack.c.bf16 %v3138_v5, %v3137_v3 }
 0x835   : > { %4208 = vmatpush3.bf16.msra.mxu0 %v4205_v10 }
 0x836   : > { %3690 = vmatmul.mubr.msk.f32.vlgmr.msra.gmra.mrb[10].mxu1 %vm61_vm0, %v1450_v23  ;;  %4210 = vmatprep.subr.bf16.mxu0 %v4209_v15  ;;  %v3145_v23 = vld [vmem:[%s5715_s2 + $0xd0] sm:$0xff] }
 0x837   : > { %4176 = vmatpush3.bf16.msra.mxu1 %v4173_v7  ;;  %3692 = vmatprep.mubr.msk.f32.mxu1 %vm61_vm0, %v1451_v26  ;;  %v3141_v7 = vld [vmem:[%s5715_s2 + $0xb0] sm:$0xff]  ;;  %v4225_v25 = vpack.c.bf16 %v3146_v24, %v3145_v23  ;;  %v3147_v26 = vld [vmem:[%s5715_s2 + $0xe0] sm:$0xff] }
 0x838   : > { %4178 = vmatprep.subr.bf16.mxu1 %v4177_v22  ;;  %v4217_v9 = vpack.c.bf16 %v3142_v18, %v3141_v7  ;;  %v2041_v24 = vld [vmem:[%s5715_s2 + $0x30] sm:$0xff] }
 0x839   : > { %4212 = vmatpush3.bf16.msra.mxu0 %v4209_v15  ;;  %v2037_v15 = vld [vmem:[%s5715_s2 + $0x10] sm:$0xff] }
 0x83a   : > { %3693 = vmatmul.mubr.msk.f32.gmra.mrb[12].mxu1 %vm61_vm0, %v1452_v28  ;;  %4214 = vmatprep.subr.bf16.mxu0 %v4213_v17  ;;  %v4241_v18 = vpack.c.bf16 %v2038_v16, %v2037_v15  ;;  %v3165_v16 = vld [vmem:[%s5715_s2 + $0x170] sm:$0xff] }
 0x83b   : > { %4180 = vmatpush3.bf16.msra.mxu1 %v4177_v22  ;;  %3703 = vmatprep.mubr.msk.f32.mxu1 %vm61_vm0, %v1559_v31  ;;  %v4221_v22 = vpack.c.bf16 %v3144_v20, %v3143_v19  ;;  %v4233_v31 = vpack.c.bf16 %v3150_v11, %v3149_v29  ;;  %v2039_v19 = vld [vmem:[%s5715_s2 + $0x20] sm:$0xff]  ;;  %v2040_v20 = vld [vmem:[%s5715_s2 + $0x28] sm:$0xff]  ;;  %v2045_v29 = vld [vmem:[%s5715_s2 + $0x50] sm:$0xff] }
 0x83c   : > { %4182 = vmatprep.subr.bf16.mxu1 %v4181_v27  ;;  %v2046_v11 = vld [vmem:[%s5715_s2 + $0x58] sm:$0xff] }
 0x83d   : > { %4216 = vmatpush3.bf16.msra.mxu0 %v4213_v17 }
 0x83e   : > { %3704 = vmatmul.mubr.msk.f32.vlgmr.msra.gmra.mrb[10].mxu1 %vm61_vm0, %v1560_v33  ;;  %4218 = vmatprep.subr.bf16.mxu0 %v4217_v9  ;;  %v2036_v33 = vld [vmem:[%s5715_s2 + $0x8] sm:$0xff] }
 0x83f   : > { %4184 = vmatpush3.bf16.msra.mxu1 %v4181_v27  ;;  %3706 = vmatprep.mubr.msk.f32.mxu1 %vm61_vm0, %v1561_v36  ;;  %v3148_v27 = vld [vmem:[%s5715_s2 + $0xe8] sm:$0xff] }
 0x840   : > { %4186 = vmatprep.subr.bf16.mxu1 %v4185_v32  ;;  %v4229_v28 = vpack.c.bf16 %v3148_v27, %v3147_v26  ;;  %v2364_v36 = vld [vmem:[%s5720_s7 + $0x8] sm:$0xff] }
 0x841   : > { %4220 = vmatpush3.bf16.msra.mxu0 %v4217_v9  ;;  %v2044_v27 = vld [vmem:[%s5715_s2 + $0x48] sm:$0xff] }
 0x842   : > { %3707 = vmatmul.mubr.msk.f32.gmra.mrb[12].mxu1 %vm61_vm0, %v1562_v39  ;;  %4222 = vmatprep.subr.bf16.mxu0 %v4221_v22  ;;  %v5294_v39 = vpack.c.bf16 %v2364_v36, %v2363_v14  ;;  %v2049_v14 = vld [vmem:[%s5715_s2 + $0x70] sm:$0xff]  ;;  %v2050_v36 = vld [vmem:[%s5715_s2 + $0x78] sm:$0xff] }
 0x843   : > { %4188 = vmatpush3.bf16.msra.mxu1 %v4185_v32  ;;  %3717 = vmatprep.mubr.msk.f32.mxu1 %vm61_vm0, %v1669_v21  ;;  %v2035_v32 = vld [vmem:[%s5715_s2] sm:$0xff] }
 0x844   : > { %4190 = vmatprep.subr.bf16.mxu1 %v4189_v37  ;;  %v4237_v35 = vpack.c.bf16 %v2036_v33, %v2035_v32  ;;  %v2367_v21 = vld [vmem:[%s5720_s7 + $0x20] sm:$0xff]  ;;  %v2048_v33 = vld [vmem:[%s5715_s2 + $0x68] sm:$0xff] }
 0x845   : > { %4224 = vmatpush3.bf16.msra.mxu0 %v4221_v22  ;;  %v2047_v32 = vld [vmem:[%s5715_s2 + $0x60] sm:$0xff] }
 0x846   : > { %3718 = vmatmul.mubr.msk.f32.vlgmr.msra.gmra.mrb[10].mxu1 %vm61_vm0, %v1670_v38  ;;  %4226 = vmatprep.subr.bf16.mxu0 %v4225_v25 }
 0x847   : > { %4192 = vmatpush3.bf16.msra.mxu1 %v4189_v37  ;;  %3720 = vmatprep.mubr.msk.f32.mxu1 %vm61_vm0, %v1671_v51  ;;  %v2365_v37 = vld [vmem:[%s5720_s7 + $0x10] sm:$0xff] }
 0x848   : > { %4194 = vmatprep.subr.bf16.mxu1 %v4193_v43  ;;  %v5300_v42 = vpack.c.bf16 %v2366_v41, %v2365_v37  ;;  %v4265_v37 = vpack.c.bf16 %v2050_v36, %v2049_v14  ;;  %v3151_v41 = vld [vmem:[%s5715_s2 + $0x100] sm:$0xff] }
 0x849   : > { %4228 = vmatpush3.bf16.msra.mxu0 %v4225_v25  ;;  %v2042_v25 = vld [vmem:[%s5715_s2 + $0x38] sm:$0xff] }
 0x84a   : > { %3721 = vmatmul.mubr.msk.f32.gmra.mrb[12].mxu1 %vm61_vm0, %v1672_v53  ;;  %4230 = vmatprep.subr.bf16.mxu0 %v4229_v28  ;;  %v4249_v26 = vpack.c.bf16 %v2042_v25, %v2041_v24  ;;  %v2373_v24 = vld [vmem:[%s5720_s7 + $0x50] sm:$0xff]  ;;  %v2374_v25 = vld [vmem:[%s5720_s7 + $0x58] sm:$0xff] }
 0x84b   : > { %4196 = vmatpush3.bf16.msra.mxu1 %v4193_v43  ;;  %3731 = vmatprep.mubr.msk.f32.mxu1 %vm61_vm0, %v1779_v56  ;;  %v2368_v43 = vld [vmem:[%s5720_s7 + $0x28] sm:$0xff] }
 0x84c   : > { %4198 = vmatprep.subr.bf16.mxu1 %v4197_v52  ;;  %v5310_v38 = vpack.c.bf16 %v2368_v43, %v2367_v21  ;;  %v3152_v21 = vld [vmem:[%s5715_s2 + $0x108] sm:$0xff] }
 0x84d   : > { %4232 = vmatpush3.bf16.msra.mxu0 %v4229_v28  ;;  %v4269_v43 = vpack.c.bf16 %v3152_v21, %v3151_v41 }
 0x84e   : > { %3732 = vmatmul.mubr.msk.f32.vlgmr.msra.gmra.mrb[10].mxu1 %vm61_vm0, %v1780_v60  ;;  %4234 = vmatprep.subr.bf16.mxu0 %v4233_v31 }
 0x84f   : > { %4200 = vmatpush3.bf16.msra.mxu1 %v4197_v52  ;;  %3734 = vmatprep.mubr.msk.f32.mxu1 %vm61_vm0, %v1781_v63 }
 0x850   : > { %4202 = vmatprep.subr.bf16.mxu1 %v4201_v57 }
 0x851   : > { %4236 = vmatpush3.bf16.msra.mxu0 %v4233_v31  ;;  %v4257_v31 = vpack.c.bf16 %v2046_v11, %v2045_v29  ;;  %v2378_v29 = vld [vmem:[%s5720_s7 + $0x78] sm:$0xff] }
 0x852   : > { %3735 = vmatmul.mubr.msk.f32.gmra.mrb[12].mxu1 %vm61_vm0, %v1782_v30  ;;  %4238 = vmatprep.subr.bf16.mxu0 %v4237_v35 }
 0x853   : > { %4204 = vmatpush3.bf16.msra.mxu1 %v4201_v57  ;;  %3745 = vmatprep.mubr.msk.f32.mxu1 %vm61_vm0, %v1889_v0 }
 0x854   : > { %4301 = vmatprep.subr.bf16.mxu1 %v4571_v13 }
 0x856   : > { %3746 = vmatmul.mubr.msk.f32.vlgmr.msra.gmra.mrb[10].mxu1 %vm61_vm0, %v1890_v1 }
 0x857   : > { %3748 = vmatprep.mubr.msk.f32.mxu1 %vm61_vm0, %v1891_v2  ;;  %4303 = vmatpush3.bf16.msra.mxu1 %v5294_v39 }
 0x858   : > { %4304 = vmatprep.subr.bf16.mxu1 %v4571_v13 }
 0x85a   : > { %3749 = vmatmul.mubr.msk.f32.gmra.mrb[12].mxu1 %vm61_vm0, %v1892_v4  ;;  %vm2821_vm0 = vcmask (%p75_p0), 1042434  }
 0x85b   : > { %3897 = vmatprep.mubr.msk.f32.mxu1 %vm4572_vm2, %v4573_v50  ;;  %4306 = vmatpush3.bf16.msra.mxu1 %v5300_v42 }
 0x85c   : > { %4307 = vmatprep.subr.bf16.mxu1 %v4571_v13 }
 0x85f   : > { %4309 = vmatpush3.bf16.msra.mxu1 %v5310_v38 }
 0x860   : > { %4310 = vmatprep.subr.bf16.mxu1 %v4571_v13 }
 0x929   : > { %v3747_v48 = vpop.f32.mrb[10].mxu1 }
 0x92a   : > { %v2000_v49 = vsub.f32 0.0, %v3747_v48  ;;  %v1976_v51 = vpop.f32.mrb[11].mxu1  ;;  %v3153_v48 = vld [vmem:[%s5715_s2 + $0x110] sm:$0xff] }
 0x92b   : > { %v1999_v52 = vsub.f32 0.0, %v1976_v51 }
 0x92c   : > { %v2005_v53 = vmul.f32 1.442695, %v2000_v49  ;;  %v3154_v49 = vld [vmem:[%s5715_s2 + $0x118] sm:$0xff] }
 0x92d   : > { %v2003_v54 = vmul.f32 1.442695, %v1999_v52  ;;  %v3750_v55 = vpop.f32.mrb[12].mxu1  ;;  %v4273_v51 = vpack.c.bf16 %v3154_v49, %v3153_v48 }
 0x92e   : > { %4512 = vpow2.f32 %v2005_v53  ;;  %v2002_v56 = vsub.f32 0.0, %v3750_v55  ;;  %v1986_v57 = vpop.f32.mrb[13].mxu1  ;;  %v3155_v53 = vld [vmem:[%s5715_s2 + $0x120] sm:$0xff] }
 0x92f   : > { %4514 = vpow2.f32 %v2003_v54  ;;  %v2001_v60 = vsub.f32 0.0, %v1986_v57  ;;  %v3156_v54 = vld [vmem:[%s5715_s2 + $0x128] sm:$0xff] }
 0x930   : > { %v2009_v63 = vmul.f32 1.442695, %v2002_v56  ;;  %v4277_v56 = vpack.c.bf16 %v3156_v54, %v3155_v53 }
 0x931   : > { %v2007_v30 = vmul.f32 1.442695, %v2001_v60  ;;  %v3157_v60 = vld [vmem:[%s5715_s2 + $0x130] sm:$0xff] }
 0x932   : > { %4516 = vpow2.f32 %v2009_v63  ;;  %v3158_v63 = vld [vmem:[%s5715_s2 + $0x138] sm:$0xff] }
 0x933   : > { %4518 = vpow2.f32 %v2007_v30 }
 0x938   : > { %v4513_v0 = vpop.eup %4512 }
 0x939   : > { %v4515_v1 = vpop.eup %4514  ;;  %v2012_v2 = vadd.f32 1.0, %v4513_v0  ;;  %v4281_v0 = vpack.c.bf16 %v3158_v63, %v3157_v60 }
 0x93a   : > { %v2011_v4 = vadd.f32 1.0, %v4515_v1  ;;  %v3159_v1 = vld [vmem:[%s5715_s2 + $0x140] sm:$0xff] }
 0x93b   : > { %4520 = vrcp.f32 %v2012_v2  ;;  %v3160_v2 = vld [vmem:[%s5715_s2 + $0x148] sm:$0xff] }
 0x93c   : > { %v4517_v6 = vpop.eup %4516  ;;  %4522 = vrcp.f32 %v2011_v4  ;;  %v4285_v4 = vpack.c.bf16 %v3160_v2, %v3159_v1 }
 0x93d   : > { %v4519_v8 = vpop.eup %4518  ;;  %v2014_v10 = vadd.f32 1.0, %v4517_v6  ;;  %v3161_v6 = vld [vmem:[%s5715_s2 + $0x150] sm:$0xff] }
 0x93e   : > { %v2013_v3 = vadd.f32 1.0, %v4519_v8  ;;  %v3162_v8 = vld [vmem:[%s5715_s2 + $0x158] sm:$0xff] }
 0x93f   : > { %4524 = vrcp.f32 %v2014_v10  ;;  %v4289_v10 = vpack.c.bf16 %v3162_v8, %v3161_v6 }
 0x940   : > { %4526 = vrcp.f32 %v2013_v3  ;;  %v3163_v3 = vld [vmem:[%s5715_s2 + $0x160] sm:$0xff] }
 0x945   : > { %v4521_v5 = vpop.eup %4520 }
 0x946   : > { %v4523_v12 = vpop.eup %4522  ;;  %v2024_v17 = vmul.f32 %v4521_v5, %v5023_v59  ;;  %v3164_v5 = vld [vmem:[%s5715_s2 + $0x168] sm:$0xff] }
 0x947   : > { %v2023_v7 = vmul.f32 %v4523_v12, %v5020_v58  ;;  %v4245_v58 = vpack.c.bf16 %v2040_v20, %v2039_v19  ;;  %v4293_v15 = vpack.c.bf16 %v3164_v5, %v3163_v3  ;;  %v3166_v12 = vld [vmem:[%s5715_s2 + $0x178] sm:$0xff]  ;;  %v2369_v19 = vld [vmem:[%s5720_s7 + $0x30] sm:$0xff] }
 0x948   : > { %2028 = vst [vmem:[#allocation3 + $0x9] sm:$0xff] %v2024_v17  ;;  %v2370_v20 = vld [vmem:[%s5720_s7 + $0x38] sm:$0xff] }
 0x949   : > { %v4525_v9 = vpop.eup %4524  ;;  %2027 = vst [vmem:[#allocation3 + $0x1] sm:$0xff] %v2023_v7  ;;  %3783 = vmatprep.mubr.f32.mxu0 %v2023_v7 }
 0x94a   : > { %v4527_v22 = vpop.eup %4526  ;;  %v2026_v23 = vmul.f32 %v4525_v9, %v5042_v62  ;;  %3784 = vmatmul.mubr.f32.vlgmr.msra.gmra.mrb[4].mxu0 %v2024_v17  ;;  %v4297_v17 = vpack.c.bf16 %v3166_v12, %v3165_v16 }
 0x94b   : > { %v2025_v59 = vmul.f32 %v4527_v22, %v5035_v61  ;;  %4240 = vmatpush3.bf16.msra.mxu0 %v4237_v35  ;;  %v2043_v61 = vld [vmem:[%s5715_s2 + $0x40] sm:$0xff]  ;;  %v4261_v35 = vpack.c.bf16 %v2048_v33, %v2047_v32  ;;  %v4311_v22 = vpack.c.bf16 %v2370_v20, %v2369_v19 }
 0x94c   : > { %2030 = vst [vmem:[#allocation3 + $0x21] sm:$0xff] %v2026_v23  ;;  %4242 = vmatprep.subr.bf16.mxu0 %v4241_v18  ;;  %v4253_v28 = vpack.c.bf16 %v2044_v27, %v2043_v61  ;;  %v2376_v61 = vld [vmem:[%s5720_s7 + $0x68] sm:$0xff] }
 0x94d   : > { %2029 = vst [vmem:[#allocation3 + $0x19] sm:$0xff] %v2025_v59  ;;  %3786 = vmatprep.mubr.f32.mxu0 %v2025_v59  ;;  %4312 = vmatpush3.bf16.msra.mxu1 %v4311_v22  ;;  %v2372_v59 = vld [vmem:[%s5720_s7 + $0x48] sm:$0xff] }
 0x94e   : > { %3787 = vmatmul.mubr.f32.gmra.mrb[6].mxu0 %v2026_v23  ;;  %4313 = vmatprep.subr.bf16.mxu1 %v4571_v13  ;;  %v2371_v23 = vld [vmem:[%s5720_s7 + $0x40] sm:$0xff] }
 0x94f   : > { %4244 = vmatpush3.bf16.msra.mxu0 %v4241_v18  ;;  %v2243_v7 = vld [vmem:[#allocation3 + $0xa] sm:$0xff] }
 0x950   : > { %v2031_v62 = vld [vmem:[#allocation3] sm:$0xff]  ;;  %4246 = vmatprep.subr.bf16.mxu0 %v4245_v58  ;;  %v2032_v52 = vld [vmem:[#allocation3 + $0x8] sm:$0xff] }
 0x951   : > { %3821 = vmatprep.mubr.f32.mxu0 %v2031_v62  ;;  %v2242_v30 = vld [vmem:[#allocation3 + $0x2] sm:$0xff]  ;;  %v4317_v62 = vpack.c.bf16 %v2374_v25, %v2373_v24 }
 0x953   : > { %4248 = vmatpush3.bf16.msra.mxu0 %v4245_v58  ;;  %v2245_v9 = vld [vmem:[#allocation3 + $0x22] sm:$0xff]  ;;  %v4314_v58 = vpack.c.bf16 %v2372_v59, %v2371_v23 }
 0x954   : > { %4250 = vmatprep.subr.bf16.mxu0 %v4249_v26  ;;  %v2033_v55 = vld [vmem:[#allocation3 + $0x18] sm:$0xff]  ;;  %v2034_v57 = vld [vmem:[#allocation3 + $0x20] sm:$0xff] }
 0x955   : > { %v2244_v18 = vld [vmem:[#allocation3 + $0x1a] sm:$0xff]  ;;  %4315 = vmatpush3.bf16.msra.mxu1 %v4314_v58 }
 0x956   : > { %4316 = vmatprep.subr.bf16.mxu1 %v4571_v13 }
 0x957   : > { %4252 = vmatpush3.bf16.msra.mxu0 %v4249_v26  ;;  %v2375_v26 = vld [vmem:[%s5720_s7 + $0x60] sm:$0xff] }
 0x958   : > { %4254 = vmatprep.subr.bf16.mxu0 %v4253_v28  ;;  %v4320_v27 = vpack.c.bf16 %v2376_v61, %v2375_v26 }
 0x959   : > { %4318 = vmatpush3.bf16.msra.mxu1 %v4317_v62 }
 0x95a   : > { %4319 = vmatprep.subr.bf16.mxu1 %v4571_v13 }
 0x95b   : > { %4256 = vmatpush3.bf16.msra.mxu0 %v4253_v28  ;;  %v2377_v28 = vld [vmem:[%s5720_s7 + $0x70] sm:$0xff] }
 0x95c   : > { %4258 = vmatprep.subr.bf16.mxu0 %v4257_v31  ;;  %v4323_v11 = vpack.c.bf16 %v2378_v29, %v2377_v28 }
 0x95d   : > { %4321 = vmatpush3.bf16.msra.mxu1 %v4320_v27 }
 0x95e   : > { %4322 = vmatprep.subr.bf16.mxu1 %v4571_v13 }
 0x95f   : > { %4260 = vmatpush3.bf16.msra.mxu0 %v4257_v31 }
 0x960   : > { %4262 = vmatprep.subr.bf16.mxu0 %v4261_v35 }
 0x961   : > { %4324 = vmatpush3.bf16.msra.mxu1 %v4323_v11 }
 0x962   : > { %4325 = vmatprep.subr.bf16.mxu1 %v4571_v13 }
 0x963   : > { %4264 = vmatpush3.bf16.msra.mxu0 %v4261_v35 }
 0x964   : > { %4266 = vmatprep.subr.bf16.mxu0 %v4265_v37 }
 0x967   : > { %4268 = vmatpush3.bf16.msra.mxu0 %v4265_v37 }
 0x968   : > { %4270 = vmatprep.subr.bf16.mxu0 %v4269_v43 }
 0x96a   : > { %3822 = vmatmul.mubr.f32.vlgmr.msra.gmra.mrb[4].mxu0 %v2032_v52 }
 0x96b   : > { %3824 = vmatprep.mubr.f32.mxu0 %v2033_v55  ;;  %4272 = vmatpush3.bf16.msra.mxu0 %v4269_v43 }
 0x96c   : > { %4274 = vmatprep.subr.bf16.mxu0 %v4273_v51 }
 0x96e   : > { %3825 = vmatmul.mubr.f32.gmra.mrb[6].mxu0 %v2034_v57 }
 0x96f   : > { %4276 = vmatpush3.bf16.msra.mxu0 %v4273_v51  ;;  %3859 = vmatprep.mubr.f32.mxu0 %v2242_v30 }
 0x970   : > { %4278 = vmatprep.subr.bf16.mxu0 %v4277_v56 }
 0x973   : > { %4280 = vmatpush3.bf16.msra.mxu0 %v4277_v56 }
 0x974   : > { %4282 = vmatprep.subr.bf16.mxu0 %v4281_v0 }
 0x977   : > { %4284 = vmatpush3.bf16.msra.mxu0 %v4281_v0 }
 0x978   : > { %4286 = vmatprep.subr.bf16.mxu0 %v4285_v4 }
 0x97b   : > { %4288 = vmatpush3.bf16.msra.mxu0 %v4285_v4 }
 0x97c   : > { %4290 = vmatprep.subr.bf16.mxu0 %v4289_v10 }
 0x97f   : > { %4292 = vmatpush3.bf16.msra.mxu0 %v4289_v10 }
 0x980   : > { %4294 = vmatprep.subr.bf16.mxu0 %v4293_v15 }
 0x983   : > { %4296 = vmatpush3.bf16.msra.mxu0 %v4293_v15  ;;  %v2352_v15 = vld [vmem:[%s5718_s5] sm:$0x1] }
 0x984   : > { %4298 = vmatprep.subr.bf16.mxu0 %v4297_v17 }
 0x987   : > { %4300 = vmatpush3.bf16.msra.mxu0 %v4297_v17 }
 0x98a   : > { %3860 = vmatmul.mubr.f32.vlgmr.msra.gmra.mrb[4].mxu0 %v2243_v7  ;;  %v3167_v7 = vld [vmem:[%s5719_s6] ss:$0 sm:$0xff] }
 0x98b   : > { %3862 = vmatprep.mubr.f32.mxu0 %v2244_v18 }
 0x98e   : > { %3863 = vmatmul.mubr.f32.gmra.mrb[6].mxu0 %v2245_v9 }
 0xa5d   : > { %v3861_v31 = vpop.f32.mrb[4].mxu0 }
 0xa5e   : > { %v2329_v32 = vpop.f32.mrb[5].mxu0 }
 0xa5f   : > { %v2354_v33 = vadd.f32 %v3861_v31, %v2329_v32 }
 0xa61   : > { %v3864_v35 = vpop.f32.mrb[6].mxu0 }
 0xa62   : > { %v2339_v14 = vpop.f32.mrb[7].mxu0 }
 0xa63   : > { %v2355_v36 = vadd.f32 %v2354_v33, %v2339_v14  ;;  %v2918_v33 = vld [vmem:[%s5726_s13 + $0x8] sm:$0xff] (%p75_p0) }
 0xa65   : > { %v2356_v37 = vadd.f32 %v3864_v35, %v2355_v36  ;;  %v4582_v36 = vmov (%p75_p0), 1983009808  }
 0xa67   : > { %v2357_v41 = vrot.slane %v2356_v37, 4 }
 0xa69   : > { %v2358_v21 = vadd.f32 %v2357_v41, %v2356_v37  ;;  %v2592_v37 = vunpack.c.l.s4 (%p75_p0), %v4582_v36 }
 0xa6b   : > { %v2359_v43 = vrot.slane %v2358_v21, 2 }
 0xa6d   : > { %v2360_v48 = vadd.f32 %v2359_v43, %v2358_v21  ;;  %v2919_v43 = vld [vmem:[%s5726_s13 + $0x10] sm:$0xff] (%p75_p0) }
 0xa6f   : > { %v2361_v49 = vrot.slane %v2360_v48, 1 }
 0xa71   : > { %v2362_v51 = vadd.f32 %v2361_v49, %v2360_v48  ;;  %v2920_v48 = vld [vmem:[%s5726_s13 + $0x18] sm:$0xff] (%p75_p0)  ;;  %v2791_v49 = vld [vmem:[%s5725_s12 + $0x20] sm:$0xff] (%p75_p0) }
 0xa73   : > { %3898 = vmatmul.mubr.f32.vlgmr.msra.gmra.mrb[14].mxu1 %v2362_v51  ;;  %v4385_v51 = vpack.c.bf16 (%p75_p0), %v2920_v48, %v2919_v43 }
 0xa74   : > { %4327 = vmatpush3.bf16.msra.mxu1 %v5294_v39  ;;  %3932 = vmatprep.mubr.msk.f32.mxu1 %vm4572_vm2, %v4573_v50 }
 0xa75   : > { %4328 = vmatprep.subr.bf16.mxu1 %v4571_v13 }
 0xa78   : > { %4330 = vmatpush3.bf16.msra.mxu1 %v5300_v42 }
 0xa79   : > { %4331 = vmatprep.subr.bf16.mxu1 %v4571_v13 }
 0xa7c   : > { %4333 = vmatpush3.bf16.msra.mxu1 %v5310_v38 }
 0xa7d   : > { %4334 = vmatprep.subr.bf16.mxu1 %v4571_v13 }
 0xa80   : > { %4336 = vmatpush3.bf16.msra.mxu1 %v4311_v22 }
 0xa81   : > { %4337 = vmatprep.subr.bf16.mxu1 %v4571_v13 }
 0xa84   : > { %4339 = vmatpush3.bf16.msra.mxu1 %v4314_v58 }
 0xa85   : > { %4340 = vmatprep.subr.bf16.mxu1 %v4571_v13 }
 0xa88   : > { %4342 = vmatpush3.bf16.msra.mxu1 %v4317_v62 }
 0xa89   : > { %4343 = vmatprep.subr.bf16.mxu1 %v4571_v13 }
 0xa8c   : > { %4345 = vmatpush3.bf16.msra.mxu1 %v4320_v27 }
 0xa8d   : > { %4346 = vmatprep.subr.bf16.mxu1 %v4571_v13 }
 0xa90   : > { %4348 = vmatpush3.bf16.msra.mxu1 %v4323_v11 }
 0xb46   : > { %v2445_v50 = vpop.f32.mrb[14].mxu1 }
 0xb47   : > { %v2452_v39 = vrot.slane %v2445_v50, %v4938_v40  ;;  %v3899_v42 = vpop.f32.mrb[15].mxu1  ;;  %v2792_v50 = vld [vmem:[%s5725_s12 + $0x28] sm:$0xff] (%p75_p0) }
 0xb48   :  { %v2922_v42 = vld [vmem:[%s5726_s13 + $0x28] sm:$0xff] (%p75_p0) }
 0xb49   : > { %v2453_v38 = vsub.f32 %v2329_v32, %v2452_v39  ;;  %v2454_v52 = vsub.f32 %v3861_v31, %v2452_v39  ;;  %v2455_v53 = vsub.f32 %v2339_v14, %v2452_v39  ;;  %v2456_v54 = vsub.f32 %v3864_v35, %v2452_v39  ;;  %v2789_v35 = vld [vmem:[%s5725_s12 + $0x10] sm:$0xff] (%p75_p0)  ;;  %v2790_v14 = vld [vmem:[%s5725_s12 + $0x18] sm:$0xff] (%p75_p0)  ;;  %v2921_v39 = vld [vmem:[%s5726_s13 + $0x20] sm:$0xff] (%p75_p0) }
 0xb4a   :  { %v4353_v21 = vpack.c.bf16 (%p75_p0), %v2790_v14, %v2789_v35 }
 0xb4b   : > { %v2457_v55 = vmul.f32 %v2453_v38, %v2453_v38  ;;  %v2458_v56 = vmul.f32 %v2454_v52, %v2454_v52  ;;  %v2459_v57 = vmul.f32 %v2455_v53, %v2455_v53  ;;  %v2460_v63 = vmul.f32 %v2456_v54, %v2456_v54 }
 0xb4d   : > { %v2461_v60 = vadd.f32 %v2458_v56, %v2457_v55  ;;  %v2923_v55 = vld [vmem:[%s5726_s13 + $0x30] sm:$0xff] (%p75_p0) }
 0xb4f   : > { %v2462_v30 = vadd.f32 %v2461_v60, %v2459_v57  ;;  %v4357_v60 = vpack.c.bf16 (%p75_p0), %v2792_v50, %v2791_v49 }
 0xb51   : > { %v2463_v0 = vadd.f32 %v2462_v30, %v2460_v63  ;;  %v4389_v63 = vpack.c.bf16 (%p75_p0), %v2922_v42, %v2921_v39  ;;  %v2924_v30 = vld [vmem:[%s5726_s13 + $0x38] sm:$0xff] (%p75_p0) }
 0xb53   : > { %v2464_v1 = vrot.slane %v2463_v0, 4 }
 0xb55   : > { %v2465_v2 = vadd.f32 %v2464_v1, %v2463_v0  ;;  %v2795_v0 = vld [vmem:[%s5725_s12 + $0x40] sm:$0xff] (%p75_p0) }
 0xb57   : > { %v2466_v4 = vrot.slane %v2465_v2, 2 }
 0xb59   : > { %v2467_v13 = vadd.f32 %v2466_v4, %v2465_v2 }
 0xb5b   : > { %v2468_v6 = vrot.slane %v2467_v13, 1 }
 0xb5d   : > { %v2469_v8 = vadd.f32 %v2468_v6, %v2467_v13  ;;  %v5572_v13 = vpack.c.bf16 (%p75_p0), %v2924_v30, %v2923_v55 }
 0xb5f   : > { %3933 = vmatmul.mubr.f32.vlgmr.msra.gmra.mrb[16].mxu1 %v2469_v8  ;;  %v2925_v8 = vld [vmem:[%s5726_s13 + $0x40] sm:$0xff] (%p75_p0) }
 0xc32   : > { %v2536_v10 = vpop.f32.mrb[16].mxu1 }
 0xc33   : > { %v2537_v3 = vadd.f32 1e-05, %v2536_v10  ;;  %v3934_v5 = vpop.f32.mrb[17].mxu1  ;;  %v2926_v10 = vld [vmem:[%s5726_s13 + $0x48] sm:$0xff] (%p75_p0) }
 0xc34   :  { %v5587_v5 = vpack.c.bf16 (%p75_p0), %v2926_v10, %v2925_v8 }
 0xc35   : > { %4528 = vrsqrt.f32 %v2537_v3 }
 0xc3f   : > { %v4529_v16 = vpop.eup %4528 }
 0xc40   : > { %v2541_v12 = vmul.f32 %v4529_v16, %v2352_v15  ;;  %v2798_v15 = vld [vmem:[%s5725_s12 + $0x58] sm:$0xff] (%p75_p0)  ;;  %v2927_v16 = vld [vmem:[%s5726_s13 + $0x50] sm:$0xff] (%p75_p0) }
 0xc42   : > { %v2546_v17 = vrot.slane %v2541_v12, %v4938_v40  ;;  %v2928_v12 = vld [vmem:[%s5726_s13 + $0x58] sm:$0xff] (%p75_p0) }
 0xc44   : > { %v2548_v18 = vmul.f32 %v2546_v17, %v2453_v38  ;;  %v2549_v9 = vmul.f32 %v2546_v17, %v2454_v52  ;;  %v2550_v19 = vmul.f32 %v2546_v17, %v2455_v53  ;;  %v2551_v20 = vmul.f32 %v2546_v17, %v2456_v54  ;;  %v2793_v53 = vld [vmem:[%s5725_s12 + $0x30] sm:$0xff] (%p75_p0)  ;;  %v2794_v54 = vld [vmem:[%s5725_s12 + $0x38] sm:$0xff] (%p75_p0) }
 0xc45   :  { %v2593_v52 = vunpack.c.0.s8 (%p75_p0), %v2592_v37 }
 0xc46   : > { %v2558_v22 = vadd.f32 %v3167_v7, %v2548_v18  ;;  %v2559_v23 = vadd.f32 %v3167_v7, %v2549_v9  ;;  %v2560_v59 = vadd.f32 %v3167_v7, %v2550_v19  ;;  %v2561_v58 = vadd.f32 %v3167_v7, %v2551_v20  ;;  %v2799_v20 = vld [vmem:[%s5725_s12 + $0x60] sm:$0xff] (%p75_p0) }
 0xc47   :  { %v5605_v19 = vpack.c.bf16 (%p75_p0), %v2928_v12, %v2927_v16 }
 0xc48   : > { %vm2562_vm2 = vcmp.ge.f32.partialorder %v2558_v22, 0.0  ;;  %vm2563_vm15 = vcmp.ge.f32.partialorder %v2559_v23, 0.0  ;;  %vm2564_vm1 = vcmp.ge.f32.partialorder %v2560_v59, 0.0  ;;  %vm2565_vm3 = vcmp.ge.f32.partialorder %v2561_v58, 0.0 }
 0xc49   : > { %v2566_v24 = vmul.f32 0.01, %v2558_v22  ;;  %v2567_v25 = vmul.f32 0.01, %v2559_v23  ;;  %v2568_v62 = vmul.f32 0.01, %v2560_v59 }
 0xc4a   : > { %v2569_v40 = vmul.f32 0.01, %v2561_v58  ;;  %77 = sbr.rel (!%p75_p0) target bundleno = 10 (0xa), region = 101 }
 0xc4b   : > { %v2570_v26 = vsel %vm2562_vm2, %v2558_v22, %v2566_v24  ;;  %v2571_v61 = vsel %vm2563_vm15, %v2559_v23, %v2567_v25  ;;  %v2572_v27 = vsel %vm2564_vm1, %v2560_v59, %v2568_v62  ;;  %v2800_v22 = vld [vmem:[%s5725_s12 + $0x68] sm:$0xff] (%p75_p0)  ;;  %v2929_v23 = vld [vmem:[%s5726_s13 + $0x60] sm:$0xff] (%p75_p0)  ;;  %v2801_v62 = vld [vmem:[%s5725_s12 + $0x70] sm:$0xff] (%p75_p0) }
 0xc4c   : > { %v2573_v28 = vsel %vm2565_vm3, %v2561_v58, %v2569_v40  ;;  %v5465_v1 = vadd.f32 %v2570_v26, %v4950_v44   ;;  %v5468_v2 = vadd.f32 %v2571_v61, %v4952_v45   ;;  %v5471_v3 = vadd.f32 %v2572_v27, %v4954_v46   ;;  %v2787_v44 = vld [vmem:[%s5725_s12] sm:$0xff] (%p75_p0)  ;;  %v2788_v45 = vld [vmem:[%s5725_s12 + $0x8] sm:$0xff] (%p75_p0)  ;;  %v2802_v40 = vld [vmem:[%s5725_s12 + $0x78] sm:$0xff] (%p75_p0) }
 0xc4d   : > { %v5474_v4 = vadd.f32 %v2573_v28, %v4956_v47   ;;  %v2917_v46 = vld [vmem:[%s5726_s13] sm:$0xff] (%p75_p0)  ;;  %v4349_v47 = vpack.c.bf16 (%p75_p0), %v2788_v45, %v2787_v44  ;;  %v5621_v24 = vpack.c.bf16 (%p75_p0), %v2800_v22, %v2799_v20  ;;  %v2930_v25 = vld [vmem:[%s5726_s13 + $0x68] sm:$0xff] (%p75_p0)  ;;  %v2932_v44 = vld [vmem:[%s5726_s13 + $0x78] sm:$0xff] (%p75_p0) }
 0xc4e   : > { %v5729_v29 = vmov %v5465_v1  ;;  %v5730_v11 = vmov %v5468_v2  ;;  %v5731_v31 = vmov %v5471_v3  ;;  %v4381_v41 = vpack.c.bf16 (%p75_p0), %v2918_v33, %v2917_v46 }
 0xc4f   : > { %v5732_v32 = vmov %v5474_v4  ;;  %v5734_v3 = vmov %v5731_v31  ;;  %v5735_v2 = vmov %v5730_v11  ;;  %v5736_v1 = vmov %v5729_v29  ;;  %2582 = vst [vmem:[%s5727_s14] sm:$0xff] (%p75_p0), %v5729_v29  ;;  %2583 = vst [vmem:[%s5727_s14 + $0x8] sm:$0xff] (%p75_p0), %v5730_v11  ;;  %4350 = vmatprep.subr.bf16.mxu0 (%p75_p0), %v4349_v47 }
 0xc50   : > { %v5733_v4 = vmov %v5732_v32  ;;  %2584 = vst [vmem:[%s5727_s14 + $0x10] sm:$0xff] (%p75_p0), %v5731_v31  ;;  %2585 = vst [vmem:[%s5727_s14 + $0x18] sm:$0xff] (%p75_p0), %v5732_v32  ;;  %v2590_v38 = vcombine.high (%p75_p0), %v5729_v29, %v5729_v29  ;;  %4382 = vmatprep.subr.bf16.mxu1 (%p75_p0), %v4381_v41  ;;  %4352 = vmatpush3.bf16.msra.mxu0 (%p75_p0), %v4349_v47  ;;  %v2607_v56 = vcombine.high (%p75_p0), %v5730_v11, %v5730_v11  ;;  %v2796_v1 = vld [vmem:[%s5725_s12 + $0x48] sm:$0xff] (%p75_p0) }
 0xc51   :  { %v2624_v57 = vcombine.high %v5731_v31, %v5731_v31  ;;  %4384 = vmatpush3.bf16.msra.mxu1 %v4381_v41  ;;  %4354 = vmatprep.subr.bf16.mxu0 %v4353_v21  ;;  %v5568_v2 = vsub.s32 %v2593_v52, %v4935_v34  ;;  %v5570_v4 = vpack.c.bf16 %v2794_v54, %v2793_v53  ;;  %v2797_v34 = vld [vmem:[%s5725_s12 + $0x50] sm:$0xff] }
 0xc52   :  { %4386 = vmatprep.subr.bf16.mxu1 %v4385_v51  ;;  %v5574_v6 = vpack.c.bf16 %v2796_v1, %v2795_v0  ;;  %v2641_v3 = vcombine.high %v5732_v32, %v5732_v32  ;;  %v5603_v9 = vpack.c.bf16 %v2798_v15, %v2797_v34  ;;  %v5633_v28 = vpack.c.bf16 %v2930_v25, %v2929_v23 }
 0xc53   :  { %v2597_v17 = vrot.slane %v5729_v29, %v5568_v2  ;;  %v2604_v7 = vrot.slane %v2590_v38, %v5568_v2  ;;  %v2614_v18 = vrot.slane %v5730_v11, %v5568_v2  ;;  %v2621_v59 = vrot.slane %v2607_v56, %v5568_v2  ;;  %v2931_v11 = vld [vmem:[%s5726_s13 + $0x70] sm:$0xff] }
 0xc54   :  { %4356 = vmatpush3.bf16.msra.mxu0 %v4353_v21  ;;  %v5619_v58 = vrot.slane %v5731_v31, %v5568_v2  ;;  %v5635_v29 = vpack.c.bf16 %v2802_v40, %v2801_v62  ;;  %v5643_v47 = vpack.c.bf16 %v2932_v44, %v2931_v11 }
 0xc55   :  { %4388 = vmatpush3.bf16.msra.mxu1 %v4385_v51  ;;  %4358 = vmatprep.subr.bf16.mxu0 %v4357_v60  ;;  %v2605_v26 = vcombine.high %v2597_v17, %v2597_v17  ;;  %v2606_v61 = vcombine.high %v2604_v7, %v2604_v7  ;;  %v2675_v27 = vsel %vm783_vm10, %v2597_v17, -inf  ;;  %v2622_v45 = vcombine.high %v2614_v18, %v2614_v18 }
 0xc56   :  { %4390 = vmatprep.subr.bf16.mxu1 %v4389_v63  ;;  %v2623_v46 = vcombine.high %v2621_v59, %v2621_v59  ;;  %v2676_v33 = vrot.slane %v2675_v27, 4  ;;  %v2689_v14 = vsel %vm783_vm10, %v2604_v7, -inf  ;;  %v2703_v21 = vsel %vm783_vm10, %v2614_v18, -inf }
 0xc57   :  { %v2682_v35 = vsel %vm783_vm10, %v2605_v26, -inf  ;;  %v2690_v37 = vrot.slane %v2689_v14, 4  ;;  %v2696_v41 = vsel %vm783_vm10, %v2606_v61, -inf  ;;  %v2704_v49 = vrot.slane %v2703_v21, 4 }
 0xc58   :  { %4360 = vmatpush3.bf16.msra.mxu0 %v4357_v60  ;;  %v2683_v36 = vrot.slane %v2682_v35, 4  ;;  %v2677_v43 = vmax.f32 %v2675_v27, %v2676_v33  ;;  %v2697_v48 = vrot.slane %v2696_v41, 4  ;;  %v2710_v51 = vsel %vm783_vm10, %v2622_v45, -inf }
 0xc59   :  { %4392 = vmatpush3.bf16.msra.mxu1 %v4389_v63  ;;  %4362 = vmatprep.subr.bf16.mxu0 %v5570_v4  ;;  %v2691_v39 = vmax.f32 %v2689_v14, %v2690_v37  ;;  %v2711_v42 = vrot.slane %v2710_v51, 4  ;;  %v2717_v38 = vsel %vm783_vm10, %v2621_v59, -inf  ;;  %v2705_v54 = vmax.f32 %v2703_v21, %v2704_v49 }
 0xc5a   :  { %4394 = vmatprep.subr.bf16.mxu1 %v5572_v13  ;;  %v2684_v50 = vmax.f32 %v2682_v35, %v2683_v36  ;;  %v2678_v52 = vrot.slane %v2677_v43, 2  ;;  %v2698_v53 = vmax.f32 %v2696_v41, %v2697_v48  ;;  %v2718_v55 = vrot.slane %v2717_v38, 4 }
 0xc5b   :  { %v2692_v60 = vrot.slane %v2691_v39, 2  ;;  %v2712_v63 = vmax.f32 %v2710_v51, %v2711_v42  ;;  %v2724_v30 = vsel %vm783_vm10, %v2623_v46, -inf  ;;  %v2706_v8 = vrot.slane %v2705_v54, 2 }
 0xc5c   :  { %4364 = vmatpush3.bf16.msra.mxu0 %v5570_v4  ;;  %v2685_v56 = vrot.slane %v2684_v50, 2  ;;  %v2679_v0 = vmax.f32 %v2677_v43, %v2678_v52  ;;  %v2699_v1 = vrot.slane %v2698_v53, 2  ;;  %v2719_v10 = vmax.f32 %v2717_v38, %v2718_v55 }
 0xc5d   :  { %4396 = vmatpush3.bf16.msra.mxu1 %v5572_v13  ;;  %4366 = vmatprep.subr.bf16.mxu0 %v5574_v6  ;;  %v2693_v15 = vmax.f32 %v2691_v39, %v2692_v60  ;;  %v2713_v4 = vrot.slane %v2712_v63, 2  ;;  %v2725_v16 = vrot.slane %v2724_v30, 4  ;;  %v2707_v7 = vmax.f32 %v2705_v54, %v2706_v8 }
 0xc5e   :  { %4398 = vmatprep.subr.bf16.mxu1 %v5587_v5  ;;  %v2686_v34 = vmax.f32 %v2684_v50, %v2685_v56  ;;  %v2680_v12 = vrot.slane %v2679_v0, 1  ;;  %v2700_v17 = vmax.f32 %v2698_v53, %v2699_v1  ;;  %v2720_v18 = vrot.slane %v2719_v10, 2 }
 0xc5f   :  { %v2694_v20 = vrot.slane %v2693_v15, 1  ;;  %v2714_v22 = vmax.f32 %v2712_v63, %v2713_v4  ;;  %v2726_v23 = vmax.f32 %v2724_v30, %v2725_v16  ;;  %v2708_v62 = vrot.slane %v2707_v7, 1 }
 0xc60   :  { %4368 = vmatpush3.bf16.msra.mxu0 %v5574_v6  ;;  %v2687_v13 = vrot.slane %v2686_v34, 1  ;;  %v2681_v59 = vmax.f32 %v2679_v0, %v2680_v12  ;;  %v2701_v25 = vrot.slane %v2700_v17, 1  ;;  %v2721_v40 = vmax.f32 %v2719_v10, %v2720_v18 }
 0xc61   :  { %4400 = vmatpush3.bf16.msra.mxu1 %v5587_v5  ;;  %4370 = vmatprep.subr.bf16.mxu0 %v5603_v9  ;;  %v2695_v61 = vmax.f32 %v2693_v15, %v2694_v20  ;;  %v2715_v27 = vrot.slane %v2714_v22, 1  ;;  %v2727_v11 = vrot.slane %v2726_v23, 2  ;;  %v2709_v6 = vmax.f32 %v2707_v7, %v2708_v62 }
 0xc62   :  { %4402 = vmatprep.subr.bf16.mxu1 %v5605_v19  ;;  %v2688_v26 = vmax.f32 %v2686_v34, %v2687_v13  ;;  %v2702_v44 = vmax.f32 %v2700_v17, %v2701_v25  ;;  %v2722_v45 = vrot.slane %v2721_v40, 1  ;;  %v2638_v5 = vrot.slane %v2624_v57, %v5568_v2 }
 0xc63   :  { %v2716_v46 = vmax.f32 %v2714_v22, %v2715_v27  ;;  %v2728_v33 = vmax.f32 %v2726_v23, %v2727_v11  ;;  %v2639_v14 = vcombine.high %v5619_v58, %v5619_v58  ;;  %v2731_v31 = vsel %vm783_vm10, %v5619_v58, -inf }
 0xc64   :  { %4372 = vmatpush3.bf16.msra.mxu0 %v5603_v9  ;;  %v2820_v35 = vsel %vm667_vm7, %v2688_v26, %v2681_v59  ;;  %v2723_v36 = vmax.f32 %v2721_v40, %v2722_v45  ;;  %v2640_v41 = vcombine.high %v2638_v5, %v2638_v5  ;;  %v2648_v21 = vrot.slane %v5732_v32, %v5568_v2 }
 0xc65   :  { %4404 = vmatpush3.bf16.msra.mxu1 %v5605_v19  ;;  %4374 = vmatprep.subr.bf16.mxu0 %v5621_v24  ;;  %v2822_v37 = vsel %vm2821_vm0, %v2695_v61, %v2820_v35  ;;  %v2729_v57 = vrot.slane %v2728_v33, 1  ;;  %v2655_v19 = vrot.slane %v2641_v3, %v5568_v2  ;;  %v2732_v48 = vrot.slane %v2731_v31, 4 }
 0xc66   :  { %4406 = vmatprep.subr.bf16.mxu1 %v5633_v28  ;;  %v2824_v9 = vsel %vm2823_vm4, %v2702_v44, %v2822_v37  ;;  %v2738_v49 = vsel %vm783_vm10, %v2639_v14, -inf  ;;  %v2745_v58 = vsel %vm783_vm10, %v2638_v5, -inf  ;;  %v2656_v39 = vcombine.high %v2648_v21, %v2648_v21 }
 0xc67   :  { %v2826_v43 = vsel %vm2825_vm5, %v2709_v6, %v2824_v9  ;;  %v2730_v51 = vmax.f32 %v2728_v33, %v2729_v57  ;;  %v2657_v42 = vcombine.high %v2655_v19, %v2655_v19  ;;  %v2733_v2 = vmax.f32 %v2731_v31, %v2732_v48 }
 0xc68   :  { %4376 = vmatpush3.bf16.msra.mxu0 %v5621_v24  ;;  %v2828_v50 = vsel %vm2827_vm6, %v2716_v46, %v2826_v43  ;;  %v2739_v3 = vrot.slane %v2738_v49, 4  ;;  %v2746_v38 = vrot.slane %v2745_v58, 4  ;;  %v2752_v24 = vsel %vm783_vm10, %v2640_v41, -inf }
 0xc69   :  { %4408 = vmatpush3.bf16.msra.mxu1 %v5633_v28  ;;  %4378 = vmatprep.subr.bf16.mxu0 %v5635_v29  ;;  %v2830_v32 = vsel %vm2829_vm8, %v2723_v36, %v2828_v50  ;;  %v2759_v53 = vsel %vm783_vm10, %v2648_v21, -inf  ;;  %v2766_v54 = vsel %vm783_vm10, %v2656_v39, -inf  ;;  %v2734_v28 = vrot.slane %v2733_v2, 2 }
 0xc6a   :  { %4410 = vmatprep.subr.bf16.mxu1 %v5643_v47  ;;  %v2832_v52 = vsel %vm2831_vm9, %v2730_v51, %v2830_v32  ;;  %v2740_v55 = vmax.f32 %v2738_v49, %v2739_v3  ;;  %v2747_v56 = vmax.f32 %v2745_v58, %v2746_v38  ;;  %v2753_v60 = vrot.slane %v2752_v24, 4 }
 0xc6b   :  { %3967 = vmatprep.mubr.f32.mxu0 %v2832_v52  ;;  %4002 = vmatprep.mubr.f32.mxu1 %v2832_v52  ;;  %v2760_v63 = vrot.slane %v2759_v53, 4  ;;  %v2767_v30 = vrot.slane %v2766_v54, 4  ;;  %v2773_v0 = vsel %vm783_vm10, %v2655_v19, -inf  ;;  %v2780_v1 = vsel %vm783_vm10, %v2657_v42, -inf }
 0xc6c   :  { %4380 = vmatpush3.bf16.msra.mxu0 %v5635_v29  ;;  %v2735_v8 = vmax.f32 %v2733_v2, %v2734_v28  ;;  %v2741_v10 = vrot.slane %v2740_v55, 2  ;;  %v2748_v34 = vrot.slane %v2747_v56, 2  ;;  %v2754_v15 = vmax.f32 %v2752_v24, %v2753_v60 }
 0xc6d   :  { %4412 = vmatpush3.bf16.msra.mxu1 %v5643_v47  ;;  %v2761_v4 = vmax.f32 %v2759_v53, %v2760_v63  ;;  %v2768_v16 = vmax.f32 %v2766_v54, %v2767_v30  ;;  %v2774_v12 = vrot.slane %v2773_v0, 4  ;;  %v2781_v17 = vrot.slane %v2780_v1, 4 }
 0xc6e   :  { %v2736_v7 = vrot.slane %v2735_v8, 1  ;;  %v2742_v18 = vmax.f32 %v2740_v55, %v2741_v10  ;;  %v2749_v13 = vmax.f32 %v2747_v56, %v2748_v34  ;;  %v2755_v29 = vrot.slane %v2754_v15, 2 }
 0xc6f   :  { %v2762_v20 = vrot.slane %v2761_v4, 2  ;;  %v2769_v22 = vrot.slane %v2768_v16, 2  ;;  %v2775_v23 = vmax.f32 %v2773_v0, %v2774_v12  ;;  %v2782_v59 = vmax.f32 %v2780_v1, %v2781_v17 }
 0xc70   :  { %v2737_v25 = vmax.f32 %v2735_v8, %v2736_v7  ;;  %v2743_v62 = vrot.slane %v2742_v18, 1  ;;  %v2750_v40 = vrot.slane %v2749_v13, 1  ;;  %v2756_v47 = vmax.f32 %v2754_v15, %v2755_v29 }
 0xc71   :  { %v2763_v26 = vmax.f32 %v2761_v4, %v2762_v20  ;;  %v2770_v61 = vmax.f32 %v2768_v16, %v2769_v22  ;;  %v2776_v27 = vrot.slane %v2775_v23, 2  ;;  %v2783_v11 = vrot.slane %v2782_v59, 2 }
 0xc72   :  { %v2744_v44 = vmax.f32 %v2742_v18, %v2743_v62  ;;  %v2751_v6 = vmax.f32 %v2749_v13, %v2750_v40  ;;  %v2757_v45 = vrot.slane %v2756_v47, 1 }
 0xc73   :  { %v2764_v5 = vrot.slane %v2763_v26, 1  ;;  %v2771_v46 = vrot.slane %v2770_v61, 1  ;;  %v2777_v33 = vmax.f32 %v2775_v23, %v2776_v27  ;;  %v2784_v35 = vmax.f32 %v2782_v59, %v2783_v11 }
 0xc74   :  { %v2758_v14 = vmax.f32 %v2756_v47, %v2757_v45  ;;  %v2833_v36 = vsel %vm667_vm7, %v2744_v44, %v2737_v25  ;;  %vm3018_vm7 = vcmask 523264  }
 0xc75   :  { %v2765_v37 = vmax.f32 %v2763_v26, %v2764_v5  ;;  %v2772_v41 = vmax.f32 %v2770_v61, %v2771_v46  ;;  %v2778_v31 = vrot.slane %v2777_v33, 1  ;;  %v2785_v57 = vrot.slane %v2784_v35, 1 }
 0xc76   :  { %v2834_v9 = vsel %vm2821_vm0, %v2751_v6, %v2833_v36 }
 0xc77   :  { %v2779_v21 = vmax.f32 %v2777_v33, %v2778_v31  ;;  %v2786_v19 = vmax.f32 %v2784_v35, %v2785_v57  ;;  %v2835_v43 = vsel %vm2823_vm4, %v2758_v14, %v2834_v9 }
 0xc78   :  { %v2836_v48 = vsel %vm2825_vm5, %v2765_v37, %v2835_v43 }
 0xc79   :  { %v2837_v49 = vsel %vm2827_vm6, %v2772_v41, %v2836_v48 }
 0xc7a   :  { %v2838_v58 = vsel %vm2829_vm8, %v2779_v21, %v2837_v49 }
 0xc7b   :  { %v2839_v51 = vsel %vm2831_vm9, %v2786_v19, %v2838_v58 }
 0xc7c   :  { %3968 = vmatmul.mubr.f32.vlgmr.msra.gmra.mrb[0].mxu0 %v2839_v51  ;;  %4003 = vmatmul.mubr.f32.vlgmr.msra.gmra.mrb[0].mxu1 %v2839_v51 }
 0xd4f   :  { %v3969_v50 = vpop.f32.mrb[0].mxu0  ;;  %v4004_v39 = vpop.f32.mrb[0].mxu1 }
 0xd50   :  { %v3009_v42 = vadd.f32 %v4004_v39, %v3969_v50  ;;  %v3011_v32 = vsub.f32 %v3969_v50, %v4004_v39  ;;  %v2908_v2 = vpop.f32.mrb[1].mxu0  ;;  %v2999_v3 = vpop.f32.mrb[1].mxu1 }
 0xd51   :  { %v3008_v38 = vadd.f32 %v2999_v3, %v2908_v2  ;;  %v3010_v52 = vsub.f32 %v2908_v2, %v2999_v3 }
 0xd52   :  { %v3013_v24 = vand.u32 2147483647, %v3011_v32 }
 0xd53   :  { %v3012_v53 = vand.u32 2147483647, %v3010_v52 }
 0xd54   :  { %v3015_v54 = vadd.f32 %v3013_v24, %v3009_v42 }
 0xd55   :  { %v3014_v28 = vadd.f32 %v3012_v53, %v3008_v38 }
 0xd56   :  { %v3017_v55 = vmul.f32 0.5, %v3015_v54 }
 0xd57   :  { %v3016_v56 = vmul.f32 0.5, %v3014_v28 }
 0xd58   :  { %3020 = vst.msk [vmem:[%s5728_s15 + $0x8] sm:$0xff] %vm3018_vm7, %v3017_v55 }
 0xd59   :  { %3019 = vst.msk [vmem:[%s5728_s15] sm:$0xff] %vm3018_vm7, %v3016_v56 }

</bundles_post_ra>
